<compile_context>
chip_gen: v7x
topology: tpu7x:2x2x1
jax: 0.10.0
libtpu: 0.0.40
codegen_flags: <defaults>
</compile_context>

<pallas_src>
import functools

import jax
import jax.numpy as jnp
from jax import lax
from jax.experimental import pallas as pl
from jax.experimental.pallas import tpu as pltpu


def adapter_kernel(x_ref, a_ref, b_ref, cb_ref, w1_ref, b1_ref, w2_ref,
                   b2_ref, bit_ref, recon_ref, kl_ref, *, hw_total, sub,
                   masked):
    f32 = jnp.float32
    C, tile = x_ref.shape
    K = a_ref.shape[0]
    Q = cb_ref.shape[1]
    G = sub // 128                       # lane groups per sub-chunk
    n_sub = tile // sub
    tile_base = pl.program_id(1) * tile

    def chunk(i, klacc):
        off = pl.multiple_of(i * sub, sub)
        xc = x_ref[:, pl.ds(off, sub)]                       # (C, sub)
        xg = [xc[:, g * 128:(g + 1) * 128] for g in range(G)]  # (C,128) each

        # ---- fused distance scan + codebook select (pure VPU) -----------
        # dist[c,k,p] = ||cb_k||^2 - 2<y_{c,p}, cb_k> = a[c,k]*x[c,p]+b[c,k]
        # constants are pre-replicated (C,128) vregs; loads shared over g.
        a0 = a_ref[0]
        b0 = b_ref[0]
        bd = [a0 * xg[g] + b0 for g in range(G)]
        c0 = [cb_ref[0, q] for q in range(Q)]
        best = [[c0[q] for _ in range(G)] for q in range(Q)]
        for k in range(1, K):
            ak = a_ref[k]
            bk = b_ref[k]
            cbk = [cb_ref[k, q] for q in range(Q)]
            for g in range(G):
                d = ak * xg[g] + bk
                take = d < bd[g]                 # strict '<': first min wins
                bd[g] = jnp.where(take, d, bd[g])
                for q in range(Q):
                    best[q][g] = jnp.where(take, cbk[q], best[q][g])

        # ---- bit_out: dense interleaved slab, row c*Q+q, one store ------
        bq = [jnp.concatenate(best[q], axis=1) for q in range(Q)]   # (C,sub)
        bits = jnp.stack(bq, axis=1).reshape(C * Q, sub)
        bit_ref[:, pl.ds(off, sub)] = bits.astype(bit_ref.dtype)

        # ---- after_quant grouped 1x1 conv: per-channel dot over Q + bias -
        w2r = [w2_ref[q] for q in range(Q)]
        b2r = b2_ref[...]
        rec = []
        for g in range(G):
            acc = b2r
            for q in range(Q):
                acc = acc + best[q][g] * w2r[q]
            rec.append(acc)
        recon_ref[:, pl.ds(off, sub)] = jnp.concatenate(rec, axis=1)

        # ---- kl partial: sum over chunk of (out - y)^2 -------------------
        w1r = [w1_ref[q] for q in range(Q)]
        b1r = [b1_ref[q] for q in range(Q)]
        for g in range(G):
            sq = jnp.zeros((C, 128), f32)
            for q in range(Q):
                y = xg[g] * w1r[q] + b1r[q]
                e = best[q][g] - y
                sq = sq + e * e
            if masked:                            # only when HW was padded
                lane = lax.broadcasted_iota(jnp.int32, (1, 128), 1)
                pix = tile_base + off + g * 128 + lane
                sq = jnp.where(pix < hw_total, sq, 0.0)
            klacc = klacc + sq
        return klacc

    klacc = lax.fori_loop(0, n_sub, chunk, jnp.zeros((C, 128), f32))
    part = jnp.sum(jnp.sum(klacc, axis=1, keepdims=True), axis=0,
                   keepdims=True)
    kl_ref[...] = part + jnp.zeros((8, 128), f32)


def adapter_forward(x_nchw, params, quant_num_bits, tile_hw=4096,
                    bit_dtype=jnp.float32):
    # bit_dtype=jnp.bfloat16 halves the dominant HBM writeback (v5e win) if
    # downstream consumers tolerate it; default keeps the module's f32.
    w1, b1, cb, w2, b2 = [jnp.asarray(p, jnp.float32) for p in params]
    N, C, H, W = x_nchw.shape
    Q = int(quant_num_bits)
    K = 2 ** Q
    HW = H * W
    L = 128

    # lane-dense spatial tiling; pad HW up to a whole number of tiles so
    # every block is full (no ragged reads, all stores unmasked).
    HW128 = ((HW + 127) // 128) * 128
    tile = max(128, min((tile_hw // 128) * 128, HW128))
    T = pl.cdiv(HW128, tile)
    HW_pad = T * tile
    sub = 256 if tile % 256 == 0 else 128

    x2 = x_nchw.reshape(N, C, HW).astype(jnp.float32)
    if HW_pad != HW:
        x2 = jnp.pad(x2, ((0, 0), (0, 0), (0, HW_pad - HW)))

    # fold pre_quant affine + codebook into per-(channel, codeword) constants
    cb_sq = jnp.sum(cb * cb, axis=1)                            # (K,)
    a_ck = -2.0 * jnp.dot(w1, cb.T)                             # (C, K)
    b_ck = cb_sq[None, :] - 2.0 * jnp.dot(b1, cb.T)             # (C, K)

    # pre-replicate every per-(c, k) / per-(c, q) scalar across 128 lanes so
    # in-kernel operands are exact (C,128) vregs (no splat materialisation).
    a_rep = jnp.broadcast_to(a_ck.T[:, :, None], (K, C, L))
    b_rep = jnp.broadcast_to(b_ck.T[:, :, None], (K, C, L))
    cb_rep = jnp.broadcast_to(cb[:, :, None, None], (K, Q, C, L))
    w1_rep = jnp.broadcast_to(w1.T[:, :, None], (Q, C, L))
    b1_rep = jnp.broadcast_to(b1.T[:, :, None], (Q, C, L))
    w2_rep = jnp.broadcast_to(w2.T[:, :, None], (Q, C, L))
    b2_rep = jnp.broadcast_to(b2[:, None], (C, L))

    kernel = functools.partial(adapter_kernel, hw_total=HW, sub=sub,
                               masked=(HW_pad != HW))

    bit3, recon3, klp = pl.pallas_call(
        kernel,
        out_shape=(
            jax.ShapeDtypeStruct((N, C * Q, HW_pad), bit_dtype),   # bit codes
            jax.ShapeDtypeStruct((N, C, HW_pad), jnp.float32),     # recon
            jax.ShapeDtypeStruct((N, T, 8, 128), jnp.float32),     # kl parts
        ),
        grid_spec=pltpu.PrefetchScalarGridSpec(
            num_scalar_prefetch=0,
            grid=(N, T),
            in_specs=[
                pl.BlockSpec((None, C, tile), lambda n, t: (n, 0, t)),    # x
                pl.BlockSpec((K, C, L), lambda n, t: (0, 0, 0)),          # a
                pl.BlockSpec((K, C, L), lambda n, t: (0, 0, 0)),          # b
                pl.BlockSpec((K, Q, C, L), lambda n, t: (0, 0, 0, 0)),    # cb
                pl.BlockSpec((Q, C, L), lambda n, t: (0, 0, 0)),          # w1
                pl.BlockSpec((Q, C, L), lambda n, t: (0, 0, 0)),          # b1
                pl.BlockSpec((Q, C, L), lambda n, t: (0, 0, 0)),          # w2
                pl.BlockSpec((C, L), lambda n, t: (0, 0)),                # b2
            ],
            out_specs=(
                pl.BlockSpec((None, C * Q, tile), lambda n, t: (n, 0, t)),
                pl.BlockSpec((None, C, tile), lambda n, t: (n, 0, t)),
                pl.BlockSpec((None, None, 8, 128), lambda n, t: (n, t, 0, 0)),
            ),
        ),
        compiler_params=pltpu.CompilerParams(
            dimension_semantics=("parallel", "parallel"),
            vmem_limit_bytes=32 * 1024 * 1024,
        ),
    )(x2, a_rep, b_rep, cb_rep, w1_rep, b1_rep, w2_rep, b2_rep)

    # kl_loss forward value: mean((out-y)^2) + 0.25*mean((out-y)^2)
    kl_loss = 1.25 * klp[:, :, 0, 0].sum() / jnp.float32(N * HW * C * Q)
    bit_out = bit3[:, :, :HW].reshape(N, C * Q, H, W)  # channel c*Q+q order
    recon_out = recon3[:, :, :HW].reshape(N, C, H, W)
    return dict(kl_loss=kl_loss, bit_out=bit_out, recon_out=recon_out)


def reference_forward(x_nchw, params, quant_num_bits):
    # Pure-JAX reference.  Uses the same (argmin-equivalent) affine distance
    # formulation as the kernel so codeword selection matches exactly; the
    # rest follows the PyTorch module directly.
    w1, b1, cb, w2, b2 = [jnp.asarray(p, jnp.float32) for p in params]
    N, C, H, W = x_nchw.shape
    Q = int(quant_num_bits)
    HW = H * W
    x = x_nchw.reshape(N, C, HW).astype(jnp.float32)

    y = x[:, :, None, :] * w1[None, :, :, None] + b1[None, :, :, None]
    a_ck = -2.0 * jnp.dot(w1, cb.T)
    b_ck = jnp.sum(cb * cb, axis=1)[None, :] - 2.0 * jnp.dot(b1, cb.T)
    dist = a_ck[None, :, :, None] * x[:, :, None, :] + b_ck[None, :, :, None]
    idx = jnp.argmin(dist, axis=2)                      # (N, C, HW)
    out = jnp.moveaxis(cb[idx], -1, 2)                  # (N, C, Q, HW)

    kl = 1.25 * jnp.mean((out - y) ** 2)
    bit = out.reshape(N, C * Q, H, W)
    recon = (jnp.sum(out * w2[None, :, :, None], axis=2)
             + b2[None, :, None]).reshape(N, C, H, W)
    return dict(kl_loss=kl, bit_out=bit, recon_out=recon)


if __name__ == "__main__":
    # config consistent with the module: hidden_channel=8, quant_num_bits=4
    N, C, H, W = 2, 8, 16, 16
    Q = 4
    K = 2 ** Q

    key = jax.random.PRNGKey(0)
    kx, kw1, kb1, kcb, kw2, kb2 = jax.random.split(key, 6)

    x = jax.random.normal(kx, (N, C, H, W), dtype=jnp.float32)
    # pre_quant: Conv2d(C, Q*C, k=1, groups=C) -> per-channel (C, Q) affine
    w1 = jax.random.normal(kw1, (C, Q), dtype=jnp.float32) * 0.5
    b1 = jax.random.normal(kb1, (C, Q), dtype=jnp.float32) * 0.1
    # codebook: Embedding(2**Q, Q), uniform(-1/2**Q, 1/2**Q)
    cb = jax.random.uniform(kcb, (K, Q), minval=-1.0 / K, maxval=1.0 / K,
                            dtype=jnp.float32)
    # after_quant: Conv2d(Q*C, C, k=1, groups=C) -> (C, Q) weight, (C,) bias
    w2 = jax.random.normal(kw2, (C, Q), dtype=jnp.float32) * 0.5
    b2 = jax.random.normal(kb2, (C,), dtype=jnp.float32) * 0.1
    params = (w1, b1, cb, w2, b2)

    res = adapter_forward(x, params, Q, tile_hw=4096)
    jax.block_until_ready(res)

    ref = reference_forward(x, params, Q)
    assert jnp.allclose(res["kl_loss"], ref["kl_loss"], atol=1e-5, rtol=1e-5)
    assert jnp.allclose(res["bit_out"], ref["bit_out"], atol=1e-5, rtol=1e-5)
    assert jnp.allclose(res["recon_out"], ref["recon_out"], atol=1e-5,
                        rtol=1e-5)

    print("KERNEL_OK")
</pallas_src>

<mosaic_0001>
module attributes {stable_mosaic.version = 11 : i64} {
  func.func @adapter_kernel(%arg0: i32, %arg1: i32, %arg2: memref<1x8x256xf32, #tpu.memory_space<vmem>>, %arg3: memref<16x8x128xf32, #tpu.memory_space<vmem>>, %arg4: memref<16x8x128xf32, #tpu.memory_space<vmem>>, %arg5: memref<16x4x8x128xf32, #tpu.memory_space<vmem>>, %arg6: memref<4x8x128xf32, #tpu.memory_space<vmem>>, %arg7: memref<4x8x128xf32, #tpu.memory_space<vmem>>, %arg8: memref<4x8x128xf32, #tpu.memory_space<vmem>>, %arg9: memref<8x128xf32, #tpu.memory_space<vmem>>, %arg10: memref<1x32x256xf32, #tpu.memory_space<vmem>>, %arg11: memref<1x8x256xf32, #tpu.memory_space<vmem>>, %arg12: memref<1x1x8x128xf32, #tpu.memory_space<vmem>>) attributes {dimension_semantics = [#tpu.dimension_semantics<parallel>, #tpu.dimension_semantics<parallel>], iteration_bounds = array<i64: 2, 1>, scalar_prefetch = 0 : i64, scratch_operands = 0 : i64, tpu.core_type = #tpu.core_type<tc>, window_params = [{transform_indices = @transform_0, window_bounds = array<i64: 1, 8, 256>}, {pipeline_mode = #tpu.pipeline_mode<synchronous>, transform_indices = @transform_1, window_bounds = array<i64: 16, 8, 128>}, {pipeline_mode = #tpu.pipeline_mode<synchronous>, transform_indices = @transform_2, window_bounds = array<i64: 16, 8, 128>}, {pipeline_mode = #tpu.pipeline_mode<synchronous>, transform_indices = @transform_3, window_bounds = array<i64: 16, 4, 8, 128>}, {pipeline_mode = #tpu.pipeline_mode<synchronous>, transform_indices = @transform_4, window_bounds = array<i64: 4, 8, 128>}, {pipeline_mode = #tpu.pipeline_mode<synchronous>, transform_indices = @transform_5, window_bounds = array<i64: 4, 8, 128>}, {pipeline_mode = #tpu.pipeline_mode<synchronous>, transform_indices = @transform_6, window_bounds = array<i64: 4, 8, 128>}, {pipeline_mode = #tpu.pipeline_mode<synchronous>, transform_indices = @transform_7, window_bounds = array<i64: 8, 128>}, {transform_indices = @transform_8, window_bounds = array<i64: 1, 32, 256>}, {transform_indices = @transform_9, window_bounds = array<i64: 1, 8, 256>}, {transform_indices = @transform_10, window_bounds = array<i64: 1, 1, 8, 128>}]} {
    %cst = arith.constant 0.000000e+00 : f32
    %0 = vector.broadcast %cst : f32 to vector<8x128xf32>
    %c0_i32 = arith.constant 0 : i32
    %c256_i32 = arith.constant 256 : i32
    %1 = arith.muli %c0_i32, %c256_i32 : i32
    %2 = tpu.assume_multiple %1, 256 : i32
    %c0 = arith.constant 0 : index
    %c0_0 = arith.constant 0 : index
    %3 = arith.index_cast %2 : i32 to index
    %4 = vector.load %arg2[%c0, %c0_0, %3] : memref<1x8x256xf32, #tpu.memory_space<vmem>>, vector<1x8x256xf32>
    %5 = vector.shape_cast %4 : vector<1x8x256xf32> to vector<8x256xf32>
    %6 = vector.extract_strided_slice %5 {offsets = [0, 0], sizes = [8, 128], strides = [1, 1]} : vector<8x256xf32> to vector<8x128xf32>
    %7 = vector.extract_strided_slice %5 {offsets = [0, 128], sizes = [8, 128], strides = [1, 1]} : vector<8x256xf32> to vector<8x128xf32>
    %c0_1 = arith.constant 0 : index
    %c0_2 = arith.constant 0 : index
    %c0_3 = arith.constant 0 : index
    %8 = vector.load %arg3[%c0_1, %c0_2, %c0_3] : memref<16x8x128xf32, #tpu.memory_space<vmem>>, vector<1x8x128xf32>
    %9 = vector.shape_cast %8 : vector<1x8x128xf32> to vector<8x128xf32>
    %c0_4 = arith.constant 0 : index
    %c0_5 = arith.constant 0 : index
    %c0_6 = arith.constant 0 : index
    %10 = vector.load %arg4[%c0_4, %c0_5, %c0_6] : memref<16x8x128xf32, #tpu.memory_space<vmem>>, vector<1x8x128xf32>
    %11 = vector.shape_cast %10 : vector<1x8x128xf32> to vector<8x128xf32>
    %12 = arith.mulf %9, %6 : vector<8x128xf32>
    %13 = arith.addf %12, %11 : vector<8x128xf32>
    %14 = arith.mulf %9, %7 : vector<8x128xf32>
    %15 = arith.addf %14, %11 : vector<8x128xf32>
    %c0_7 = arith.constant 0 : index
    %c0_8 = arith.constant 0 : index
    %c0_9 = arith.constant 0 : index
    %c0_10 = arith.constant 0 : index
    %16 = vector.load %arg5[%c0_7, %c0_8, %c0_9, %c0_10] : memref<16x4x8x128xf32, #tpu.memory_space<vmem>>, vector<1x1x8x128xf32>
    %17 = vector.shape_cast %16 : vector<1x1x8x128xf32> to vector<8x128xf32>
    %c0_11 = arith.constant 0 : index
    %c1 = arith.constant 1 : index
    %c0_12 = arith.constant 0 : index
    %c0_13 = arith.constant 0 : index
    %18 = vector.load %arg5[%c0_11, %c1, %c0_12, %c0_13] : memref<16x4x8x128xf32, #tpu.memory_space<vmem>>, vector<1x1x8x128xf32>
    %19 = vector.shape_cast %18 : vector<1x1x8x128xf32> to vector<8x128xf32>
    %c0_14 = arith.constant 0 : index
    %c2 = arith.constant 2 : index
    %c0_15 = arith.constant 0 : index
    %c0_16 = arith.constant 0 : index
    %20 = vector.load %arg5[%c0_14, %c2, %c0_15, %c0_16] : memref<16x4x8x128xf32, #tpu.memory_space<vmem>>, vector<1x1x8x128xf32>
    %21 = vector.shape_cast %20 : vector<1x1x8x128xf32> to vector<8x128xf32>
    %c0_17 = arith.constant 0 : index
    %c3 = arith.constant 3 : index
    %c0_18 = arith.constant 0 : index
    %c0_19 = arith.constant 0 : index
    %22 = vector.load %arg5[%c0_17, %c3, %c0_18, %c0_19] : memref<16x4x8x128xf32, #tpu.memory_space<vmem>>, vector<1x1x8x128xf32>
    %23 = vector.shape_cast %22 : vector<1x1x8x128xf32> to vector<8x128xf32>
    %c1_20 = arith.constant 1 : index
    %c0_21 = arith.constant 0 : index
    %c0_22 = arith.constant 0 : index
    %24 = vector.load %arg3[%c1_20, %c0_21, %c0_22] : memref<16x8x128xf32, #tpu.memory_space<vmem>>, vector<1x8x128xf32>
    %25 = vector.shape_cast %24 : vector<1x8x128xf32> to vector<8x128xf32>
    %c1_23 = arith.constant 1 : index
    %c0_24 = arith.constant 0 : index
    %c0_25 = arith.constant 0 : index
    %26 = vector.load %arg4[%c1_23, %c0_24, %c0_25] : memref<16x8x128xf32, #tpu.memory_space<vmem>>, vector<1x8x128xf32>
    %27 = vector.shape_cast %26 : vector<1x8x128xf32> to vector<8x128xf32>
    %c1_26 = arith.constant 1 : index
    %c0_27 = arith.constant 0 : index
    %c0_28 = arith.constant 0 : index
    %c0_29 = arith.constant 0 : index
    %28 = vector.load %arg5[%c1_26, %c0_27, %c0_28, %c0_29] : memref<16x4x8x128xf32, #tpu.memory_space<vmem>>, vector<1x1x8x128xf32>
    %29 = vector.shape_cast %28 : vector<1x1x8x128xf32> to vector<8x128xf32>
    %c1_30 = arith.constant 1 : index
    %c1_31 = arith.constant 1 : index
    %c0_32 = arith.constant 0 : index
    %c0_33 = arith.constant 0 : index
    %30 = vector.load %arg5[%c1_30, %c1_31, %c0_32, %c0_33] : memref<16x4x8x128xf32, #tpu.memory_space<vmem>>, vector<1x1x8x128xf32>
    %31 = vector.shape_cast %30 : vector<1x1x8x128xf32> to vector<8x128xf32>
    %c1_34 = arith.constant 1 : index
    %c2_35 = arith.constant 2 : index
    %c0_36 = arith.constant 0 : index
    %c0_37 = arith.constant 0 : index
    %32 = vector.load %arg5[%c1_34, %c2_35, %c0_36, %c0_37] : memref<16x4x8x128xf32, #tpu.memory_space<vmem>>, vector<1x1x8x128xf32>
    %33 = vector.shape_cast %32 : vector<1x1x8x128xf32> to vector<8x128xf32>
    %c1_38 = arith.constant 1 : index
    %c3_39 = arith.constant 3 : index
    %c0_40 = arith.constant 0 : index
    %c0_41 = arith.constant 0 : index
    %34 = vector.load %arg5[%c1_38, %c3_39, %c0_40, %c0_41] : memref<16x4x8x128xf32, #tpu.memory_space<vmem>>, vector<1x1x8x128xf32>
    %35 = vector.shape_cast %34 : vector<1x1x8x128xf32> to vector<8x128xf32>
    %36 = arith.mulf %25, %6 : vector<8x128xf32>
    %37 = arith.addf %36, %27 : vector<8x128xf32>
    %38 = arith.cmpf olt, %37, %13 : vector<8x128xf32>
    %39 = arith.select %38, %37, %13 : vector<8x128xi1>, vector<8x128xf32>
    %40 = arith.select %38, %29, %17 : vector<8x128xi1>, vector<8x128xf32>
    %41 = arith.select %38, %31, %19 : vector<8x128xi1>, vector<8x128xf32>
    %42 = arith.select %38, %33, %21 : vector<8x128xi1>, vector<8x128xf32>
    %43 = arith.select %38, %35, %23 : vector<8x128xi1>, vector<8x128xf32>
    %44 = arith.mulf %25, %7 : vector<8x128xf32>
    %45 = arith.addf %44, %27 : vector<8x128xf32>
    %46 = arith.cmpf olt, %45, %15 : vector<8x128xf32>
    %47 = arith.select %46, %45, %15 : vector<8x128xi1>, vector<8x128xf32>
    %48 = arith.select %46, %29, %17 : vector<8x128xi1>, vector<8x128xf32>
    %49 = arith.select %46, %31, %19 : vector<8x128xi1>, vector<8x128xf32>
    %50 = arith.select %46, %33, %21 : vector<8x128xi1>, vector<8x128xf32>
    %51 = arith.select %46, %35, %23 : vector<8x128xi1>, vector<8x128xf32>
    %c2_42 = arith.constant 2 : index
    %c0_43 = arith.constant 0 : index
    %c0_44 = arith.constant 0 : index
    %52 = vector.load %arg3[%c2_42, %c0_43, %c0_44] : memref<16x8x128xf32, #tpu.memory_space<vmem>>, vector<1x8x128xf32>
    %53 = vector.shape_cast %52 : vector<1x8x128xf32> to vector<8x128xf32>
    %c2_45 = arith.constant 2 : index
    %c0_46 = arith.constant 0 : index
    %c0_47 = arith.constant 0 : index
    %54 = vector.load %arg4[%c2_45, %c0_46, %c0_47] : memref<16x8x128xf32, #tpu.memory_space<vmem>>, vector<1x8x128xf32>
    %55 = vector.shape_cast %54 : vector<1x8x128xf32> to vector<8x128xf32>
    %c2_48 = arith.constant 2 : index
    %c0_49 = arith.constant 0 : index
    %c0_50 = arith.constant 0 : index
    %c0_51 = arith.constant 0 : index
    %56 = vector.load %arg5[%c2_48, %c0_49, %c0_50, %c0_51] : memref<16x4x8x128xf32, #tpu.memory_space<vmem>>, vector<1x1x8x128xf32>
    %57 = vector.shape_cast %56 : vector<1x1x8x128xf32> to vector<8x128xf32>
    %c2_52 = arith.constant 2 : index
    %c1_53 = arith.constant 1 : index
    %c0_54 = arith.constant 0 : index
    %c0_55 = arith.constant 0 : index
    %58 = vector.load %arg5[%c2_52, %c1_53, %c0_54, %c0_55] : memref<16x4x8x128xf32, #tpu.memory_space<vmem>>, vector<1x1x8x128xf32>
    %59 = vector.shape_cast %58 : vector<1x1x8x128xf32> to vector<8x128xf32>
    %c2_56 = arith.constant 2 : index
    %c2_57 = arith.constant 2 : index
    %c0_58 = arith.constant 0 : index
    %c0_59 = arith.constant 0 : index
    %60 = vector.load %arg5[%c2_56, %c2_57, %c0_58, %c0_59] : memref<16x4x8x128xf32, #tpu.memory_space<vmem>>, vector<1x1x8x128xf32>
    %61 = vector.shape_cast %60 : vector<1x1x8x128xf32> to vector<8x128xf32>
    %c2_60 = arith.constant 2 : index
    %c3_61 = arith.constant 3 : index
    %c0_62 = arith.constant 0 : index
    %c0_63 = arith.constant 0 : index
    %62 = vector.load %arg5[%c2_60, %c3_61, %c0_62, %c0_63] : memref<16x4x8x128xf32, #tpu.memory_space<vmem>>, vector<1x1x8x128xf32>
    %63 = vector.shape_cast %62 : vector<1x1x8x128xf32> to vector<8x128xf32>
    %64 = arith.mulf %53, %6 : vector<8x128xf32>
    %65 = arith.addf %64, %55 : vector<8x128xf32>
    %66 = arith.cmpf olt, %65, %39 : vector<8x128xf32>
    %67 = arith.select %66, %65, %39 : vector<8x128xi1>, vector<8x128xf32>
    %68 = arith.select %66, %57, %40 : vector<8x128xi1>, vector<8x128xf32>
    %69 = arith.select %66, %59, %41 : vector<8x128xi1>, vector<8x128xf32>
    %70 = arith.select %66, %61, %42 : vector<8x128xi1>, vector<8x128xf32>
    %71 = arith.select %66, %63, %43 : vector<8x128xi1>, vector<8x128xf32>
    %72 = arith.mulf %53, %7 : vector<8x128xf32>
    %73 = arith.addf %72, %55 : vector<8x128xf32>
    %74 = arith.cmpf olt, %73, %47 : vector<8x128xf32>
    %75 = arith.select %74, %73, %47 : vector<8x128xi1>, vector<8x128xf32>
    %76 = arith.select %74, %57, %48 : vector<8x128xi1>, vector<8x128xf32>
    %77 = arith.select %74, %59, %49 : vector<8x128xi1>, vector<8x128xf32>
    %78 = arith.select %74, %61, %50 : vector<8x128xi1>, vector<8x128xf32>
    %79 = arith.select %74, %63, %51 : vector<8x128xi1>, vector<8x128xf32>
    %c3_64 = arith.constant 3 : index
    %c0_65 = arith.constant 0 : index
    %c0_66 = arith.constant 0 : index
    %80 = vector.load %arg3[%c3_64, %c0_65, %c0_66] : memref<16x8x128xf32, #tpu.memory_space<vmem>>, vector<1x8x128xf32>
    %81 = vector.shape_cast %80 : vector<1x8x128xf32> to vector<8x128xf32>
    %c3_67 = arith.constant 3 : index
    %c0_68 = arith.constant 0 : index
    %c0_69 = arith.constant 0 : index
    %82 = vector.load %arg4[%c3_67, %c0_68, %c0_69] : memref<16x8x128xf32, #tpu.memory_space<vmem>>, vector<1x8x128xf32>
    %83 = vector.shape_cast %82 : vector<1x8x128xf32> to vector<8x128xf32>
    %c3_70 = arith.constant 3 : index
    %c0_71 = arith.constant 0 : index
    %c0_72 = arith.constant 0 : index
    %c0_73 = arith.constant 0 : index
    %84 = vector.load %arg5[%c3_70, %c0_71, %c0_72, %c0_73] : memref<16x4x8x128xf32, #tpu.memory_space<vmem>>, vector<1x1x8x128xf32>
    %85 = vector.shape_cast %84 : vector<1x1x8x128xf32> to vector<8x128xf32>
    %c3_74 = arith.constant 3 : index
    %c1_75 = arith.constant 1 : index
    %c0_76 = arith.constant 0 : index
    %c0_77 = arith.constant 0 : index
    %86 = vector.load %arg5[%c3_74, %c1_75, %c0_76, %c0_77] : memref<16x4x8x128xf32, #tpu.memory_space<vmem>>, vector<1x1x8x128xf32>
    %87 = vector.shape_cast %86 : vector<1x1x8x128xf32> to vector<8x128xf32>
    %c3_78 = arith.constant 3 : index
    %c2_79 = arith.constant 2 : index
    %c0_80 = arith.constant 0 : index
    %c0_81 = arith.constant 0 : index
    %88 = vector.load %arg5[%c3_78, %c2_79, %c0_80, %c0_81] : memref<16x4x8x128xf32, #tpu.memory_space<vmem>>, vector<1x1x8x128xf32>
    %89 = vector.shape_cast %88 : vector<1x1x8x128xf32> to vector<8x128xf32>
    %c3_82 = arith.constant 3 : index
    %c3_83 = arith.constant 3 : index
    %c0_84 = arith.constant 0 : index
    %c0_85 = arith.constant 0 : index
    %90 = vector.load %arg5[%c3_82, %c3_83, %c0_84, %c0_85] : memref<16x4x8x128xf32, #tpu.memory_space<vmem>>, vector<1x1x8x128xf32>
    %91 = vector.shape_cast %90 : vector<1x1x8x128xf32> to vector<8x128xf32>
    %92 = arith.mulf %81, %6 : vector<8x128xf32>
    %93 = arith.addf %92, %83 : vector<8x128xf32>
    %94 = arith.cmpf olt, %93, %67 : vector<8x128xf32>
    %95 = arith.select %94, %93, %67 : vector<8x128xi1>, vector<8x128xf32>
    %96 = arith.select %94, %85, %68 : vector<8x128xi1>, vector<8x128xf32>
    %97 = arith.select %94, %87, %69 : vector<8x128xi1>, vector<8x128xf32>
    %98 = arith.select %94, %89, %70 : vector<8x128xi1>, vector<8x128xf32>
    %99 = arith.select %94, %91, %71 : vector<8x128xi1>, vector<8x128xf32>
    %100 = arith.mulf %81, %7 : vector<8x128xf32>
    %101 = arith.addf %100, %83 : vector<8x128xf32>
    %102 = arith.cmpf olt, %101, %75 : vector<8x128xf32>
    %103 = arith.select %102, %101, %75 : vector<8x128xi1>, vector<8x128xf32>
    %104 = arith.select %102, %85, %76 : vector<8x128xi1>, vector<8x128xf32>
    %105 = arith.select %102, %87, %77 : vector<8x128xi1>, vector<8x128xf32>
    %106 = arith.select %102, %89, %78 : vector<8x128xi1>, vector<8x128xf32>
    %107 = arith.select %102, %91, %79 : vector<8x128xi1>, vector<8x128xf32>
    %c4 = arith.constant 4 : index
    %c0_86 = arith.constant 0 : index
    %c0_87 = arith.constant 0 : index
    %108 = vector.load %arg3[%c4, %c0_86, %c0_87] : memref<16x8x128xf32, #tpu.memory_space<vmem>>, vector<1x8x128xf32>
    %109 = vector.shape_cast %108 : vector<1x8x128xf32> to vector<8x128xf32>
    %c4_88 = arith.constant 4 : index
    %c0_89 = arith.constant 0 : index
    %c0_90 = arith.constant 0 : index
    %110 = vector.load %arg4[%c4_88, %c0_89, %c0_90] : memref<16x8x128xf32, #tpu.memory_space<vmem>>, vector<1x8x128xf32>
    %111 = vector.shape_cast %110 : vector<1x8x128xf32> to vector<8x128xf32>
    %c4_91 = arith.constant 4 : index
    %c0_92 = arith.constant 0 : index
    %c0_93 = arith.constant 0 : index
    %c0_94 = arith.constant 0 : index
    %112 = vector.load %arg5[%c4_91, %c0_92, %c0_93, %c0_94] : memref<16x4x8x128xf32, #tpu.memory_space<vmem>>, vector<1x1x8x128xf32>
    %113 = vector.shape_cast %112 : vector<1x1x8x128xf32> to vector<8x128xf32>
    %c4_95 = arith.constant 4 : index
    %c1_96 = arith.constant 1 : index
    %c0_97 = arith.constant 0 : index
    %c0_98 = arith.constant 0 : index
    %114 = vector.load %arg5[%c4_95, %c1_96, %c0_97, %c0_98] : memref<16x4x8x128xf32, #tpu.memory_space<vmem>>, vector<1x1x8x128xf32>
    %115 = vector.shape_cast %114 : vector<1x1x8x128xf32> to vector<8x128xf32>
    %c4_99 = arith.constant 4 : index
    %c2_100 = arith.constant 2 : index
    %c0_101 = arith.constant 0 : index
    %c0_102 = arith.constant 0 : index
    %116 = vector.load %arg5[%c4_99, %c2_100, %c0_101, %c0_102] : memref<16x4x8x128xf32, #tpu.memory_space<vmem>>, vector<1x1x8x128xf32>
    %117 = vector.shape_cast %116 : vector<1x1x8x128xf32> to vector<8x128xf32>
    %c4_103 = arith.constant 4 : index
    %c3_104 = arith.constant 3 : index
    %c0_105 = arith.constant 0 : index
    %c0_106 = arith.constant 0 : index
    %118 = vector.load %arg5[%c4_103, %c3_104, %c0_105, %c0_106] : memref<16x4x8x128xf32, #tpu.memory_space<vmem>>, vector<1x1x8x128xf32>
    %119 = vector.shape_cast %118 : vector<1x1x8x128xf32> to vector<8x128xf32>
    %120 = arith.mulf %109, %6 : vector<8x128xf32>
    %121 = arith.addf %120, %111 : vector<8x128xf32>
    %122 = arith.cmpf olt, %121, %95 : vector<8x128xf32>
    %123 = arith.select %122, %121, %95 : vector<8x128xi1>, vector<8x128xf32>
    %124 = arith.select %122, %113, %96 : vector<8x128xi1>, vector<8x128xf32>
    %125 = arith.select %122, %115, %97 : vector<8x128xi1>, vector<8x128xf32>
    %126 = arith.select %122, %117, %98 : vector<8x128xi1>, vector<8x128xf32>
    %127 = arith.select %122, %119, %99 : vector<8x128xi1>, vector<8x128xf32>
    %128 = arith.mulf %109, %7 : vector<8x128xf32>
    %129 = arith.addf %128, %111 : vector<8x128xf32>
    %130 = arith.cmpf olt, %129, %103 : vector<8x128xf32>
    %131 = arith.select %130, %129, %103 : vector<8x128xi1>, vector<8x128xf32>
    %132 = arith.select %130, %113, %104 : vector<8x128xi1>, vector<8x128xf32>
    %133 = arith.select %130, %115, %105 : vector<8x128xi1>, vector<8x128xf32>
    %134 = arith.select %130, %117, %106 : vector<8x128xi1>, vector<8x128xf32>
    %135 = arith.select %130, %119, %107 : vector<8x128xi1>, vector<8x128xf32>
    %c5 = arith.constant 5 : index
    %c0_107 = arith.constant 0 : index
    %c0_108 = arith.constant 0 : index
    %136 = vector.load %arg3[%c5, %c0_107, %c0_108] : memref<16x8x128xf32, #tpu.memory_space<vmem>>, vector<1x8x128xf32>
    %137 = vector.shape_cast %136 : vector<1x8x128xf32> to vector<8x128xf32>
    %c5_109 = arith.constant 5 : index
    %c0_110 = arith.constant 0 : index
    %c0_111 = arith.constant 0 : index
    %138 = vector.load %arg4[%c5_109, %c0_110, %c0_111] : memref<16x8x128xf32, #tpu.memory_space<vmem>>, vector<1x8x128xf32>
    %139 = vector.shape_cast %138 : vector<1x8x128xf32> to vector<8x128xf32>
    %c5_112 = arith.constant 5 : index
    %c0_113 = arith.constant 0 : index
    %c0_114 = arith.constant 0 : index
    %c0_115 = arith.constant 0 : index
    %140 = vector.load %arg5[%c5_112, %c0_113, %c0_114, %c0_115] : memref<16x4x8x128xf32, #tpu.memory_space<vmem>>, vector<1x1x8x128xf32>
    %141 = vector.shape_cast %140 : vector<1x1x8x128xf32> to vector<8x128xf32>
    %c5_116 = arith.constant 5 : index
    %c1_117 = arith.constant 1 : index
    %c0_118 = arith.constant 0 : index
    %c0_119 = arith.constant 0 : index
    %142 = vector.load %arg5[%c5_116, %c1_117, %c0_118, %c0_119] : memref<16x4x8x128xf32, #tpu.memory_space<vmem>>, vector<1x1x8x128xf32>
    %143 = vector.shape_cast %142 : vector<1x1x8x128xf32> to vector<8x128xf32>
    %c5_120 = arith.constant 5 : index
    %c2_121 = arith.constant 2 : index
    %c0_122 = arith.constant 0 : index
    %c0_123 = arith.constant 0 : index
    %144 = vector.load %arg5[%c5_120, %c2_121, %c0_122, %c0_123] : memref<16x4x8x128xf32, #tpu.memory_space<vmem>>, vector<1x1x8x128xf32>
    %145 = vector.shape_cast %144 : vector<1x1x8x128xf32> to vector<8x128xf32>
    %c5_124 = arith.constant 5 : index
    %c3_125 = arith.constant 3 : index
    %c0_126 = arith.constant 0 : index
    %c0_127 = arith.constant 0 : index
    %146 = vector.load %arg5[%c5_124, %c3_125, %c0_126, %c0_127] : memref<16x4x8x128xf32, #tpu.memory_space<vmem>>, vector<1x1x8x128xf32>
    %147 = vector.shape_cast %146 : vector<1x1x8x128xf32> to vector<8x128xf32>
    %148 = arith.mulf %137, %6 : vector<8x128xf32>
    %149 = arith.addf %148, %139 : vector<8x128xf32>
    %150 = arith.cmpf olt, %149, %123 : vector<8x128xf32>
    %151 = arith.select %150, %149, %123 : vector<8x128xi1>, vector<8x128xf32>
    %152 = arith.select %150, %141, %124 : vector<8x128xi1>, vector<8x128xf32>
    %153 = arith.select %150, %143, %125 : vector<8x128xi1>, vector<8x128xf32>
    %154 = arith.select %150, %145, %126 : vector<8x128xi1>, vector<8x128xf32>
    %155 = arith.select %150, %147, %127 : vector<8x128xi1>, vector<8x128xf32>
    %156 = arith.mulf %137, %7 : vector<8x128xf32>
    %157 = arith.addf %156, %139 : vector<8x128xf32>
    %158 = arith.cmpf olt, %157, %131 : vector<8x128xf32>
    %159 = arith.select %158, %157, %131 : vector<8x128xi1>, vector<8x128xf32>
    %160 = arith.select %158, %141, %132 : vector<8x128xi1>, vector<8x128xf32>
    %161 = arith.select %158, %143, %133 : vector<8x128xi1>, vector<8x128xf32>
    %162 = arith.select %158, %145, %134 : vector<8x128xi1>, vector<8x128xf32>
    %163 = arith.select %158, %147, %135 : vector<8x128xi1>, vector<8x128xf32>
    %c6 = arith.constant 6 : index
    %c0_128 = arith.constant 0 : index
    %c0_129 = arith.constant 0 : index
    %164 = vector.load %arg3[%c6, %c0_128, %c0_129] : memref<16x8x128xf32, #tpu.memory_space<vmem>>, vector<1x8x128xf32>
    %165 = vector.shape_cast %164 : vector<1x8x128xf32> to vector<8x128xf32>
    %c6_130 = arith.constant 6 : index
    %c0_131 = arith.constant 0 : index
    %c0_132 = arith.constant 0 : index
    %166 = vector.load %arg4[%c6_130, %c0_131, %c0_132] : memref<16x8x128xf32, #tpu.memory_space<vmem>>, vector<1x8x128xf32>
    %167 = vector.shape_cast %166 : vector<1x8x128xf32> to vector<8x128xf32>
    %c6_133 = arith.constant 6 : index
    %c0_134 = arith.constant 0 : index
    %c0_135 = arith.constant 0 : index
    %c0_136 = arith.constant 0 : index
    %168 = vector.load %arg5[%c6_133, %c0_134, %c0_135, %c0_136] : memref<16x4x8x128xf32, #tpu.memory_space<vmem>>, vector<1x1x8x128xf32>
    %169 = vector.shape_cast %168 : vector<1x1x8x128xf32> to vector<8x128xf32>
    %c6_137 = arith.constant 6 : index
    %c1_138 = arith.constant 1 : index
    %c0_139 = arith.constant 0 : index
    %c0_140 = arith.constant 0 : index
    %170 = vector.load %arg5[%c6_137, %c1_138, %c0_139, %c0_140] : memref<16x4x8x128xf32, #tpu.memory_space<vmem>>, vector<1x1x8x128xf32>
    %171 = vector.shape_cast %170 : vector<1x1x8x128xf32> to vector<8x128xf32>
    %c6_141 = arith.constant 6 : index
    %c2_142 = arith.constant 2 : index
    %c0_143 = arith.constant 0 : index
    %c0_144 = arith.constant 0 : index
    %172 = vector.load %arg5[%c6_141, %c2_142, %c0_143, %c0_144] : memref<16x4x8x128xf32, #tpu.memory_space<vmem>>, vector<1x1x8x128xf32>
    %173 = vector.shape_cast %172 : vector<1x1x8x128xf32> to vector<8x128xf32>
    %c6_145 = arith.constant 6 : index
    %c3_146 = arith.constant 3 : index
    %c0_147 = arith.constant 0 : index
    %c0_148 = arith.constant 0 : index
    %174 = vector.load %arg5[%c6_145, %c3_146, %c0_147, %c0_148] : memref<16x4x8x128xf32, #tpu.memory_space<vmem>>, vector<1x1x8x128xf32>
    %175 = vector.shape_cast %174 : vector<1x1x8x128xf32> to vector<8x128xf32>
    %176 = arith.mulf %165, %6 : vector<8x128xf32>
    %177 = arith.addf %176, %167 : vector<8x128xf32>
    %178 = arith.cmpf olt, %177, %151 : vector<8x128xf32>
    %179 = arith.select %178, %177, %151 : vector<8x128xi1>, vector<8x128xf32>
    %180 = arith.select %178, %169, %152 : vector<8x128xi1>, vector<8x128xf32>
    %181 = arith.select %178, %171, %153 : vector<8x128xi1>, vector<8x128xf32>
    %182 = arith.select %178, %173, %154 : vector<8x128xi1>, vector<8x128xf32>
    %183 = arith.select %178, %175, %155 : vector<8x128xi1>, vector<8x128xf32>
    %184 = arith.mulf %165, %7 : vector<8x128xf32>
    %185 = arith.addf %184, %167 : vector<8x128xf32>
    %186 = arith.cmpf olt, %185, %159 : vector<8x128xf32>
    %187 = arith.select %186, %185, %159 : vector<8x128xi1>, vector<8x128xf32>
    %188 = arith.select %186, %169, %160 : vector<8x128xi1>, vector<8x128xf32>
    %189 = arith.select %186, %171, %161 : vector<8x128xi1>, vector<8x128xf32>
    %190 = arith.select %186, %173, %162 : vector<8x128xi1>, vector<8x128xf32>
    %191 = arith.select %186, %175, %163 : vector<8x128xi1>, vector<8x128xf32>
    %c7 = arith.constant 7 : index
    %c0_149 = arith.constant 0 : index
    %c0_150 = arith.constant 0 : index
    %192 = vector.load %arg3[%c7, %c0_149, %c0_150] : memref<16x8x128xf32, #tpu.memory_space<vmem>>, vector<1x8x128xf32>
    %193 = vector.shape_cast %192 : vector<1x8x128xf32> to vector<8x128xf32>
    %c7_151 = arith.constant 7 : index
    %c0_152 = arith.constant 0 : index
    %c0_153 = arith.constant 0 : index
    %194 = vector.load %arg4[%c7_151, %c0_152, %c0_153] : memref<16x8x128xf32, #tpu.memory_space<vmem>>, vector<1x8x128xf32>
    %195 = vector.shape_cast %194 : vector<1x8x128xf32> to vector<8x128xf32>
    %c7_154 = arith.constant 7 : index
    %c0_155 = arith.constant 0 : index
    %c0_156 = arith.constant 0 : index
    %c0_157 = arith.constant 0 : index
    %196 = vector.load %arg5[%c7_154, %c0_155, %c0_156, %c0_157] : memref<16x4x8x128xf32, #tpu.memory_space<vmem>>, vector<1x1x8x128xf32>
    %197 = vector.shape_cast %196 : vector<1x1x8x128xf32> to vector<8x128xf32>
    %c7_158 = arith.constant 7 : index
    %c1_159 = arith.constant 1 : index
    %c0_160 = arith.constant 0 : index
    %c0_161 = arith.constant 0 : index
    %198 = vector.load %arg5[%c7_158, %c1_159, %c0_160, %c0_161] : memref<16x4x8x128xf32, #tpu.memory_space<vmem>>, vector<1x1x8x128xf32>
    %199 = vector.shape_cast %198 : vector<1x1x8x128xf32> to vector<8x128xf32>
    %c7_162 = arith.constant 7 : index
    %c2_163 = arith.constant 2 : index
    %c0_164 = arith.constant 0 : index
    %c0_165 = arith.constant 0 : index
    %200 = vector.load %arg5[%c7_162, %c2_163, %c0_164, %c0_165] : memref<16x4x8x128xf32, #tpu.memory_space<vmem>>, vector<1x1x8x128xf32>
    %201 = vector.shape_cast %200 : vector<1x1x8x128xf32> to vector<8x128xf32>
    %c7_166 = arith.constant 7 : index
    %c3_167 = arith.constant 3 : index
    %c0_168 = arith.constant 0 : index
    %c0_169 = arith.constant 0 : index
    %202 = vector.load %arg5[%c7_166, %c3_167, %c0_168, %c0_169] : memref<16x4x8x128xf32, #tpu.memory_space<vmem>>, vector<1x1x8x128xf32>
    %203 = vector.shape_cast %202 : vector<1x1x8x128xf32> to vector<8x128xf32>
    %204 = arith.mulf %193, %6 : vector<8x128xf32>
    %205 = arith.addf %204, %195 : vector<8x128xf32>
    %206 = arith.cmpf olt, %205, %179 : vector<8x128xf32>
    %207 = arith.select %206, %205, %179 : vector<8x128xi1>, vector<8x128xf32>
    %208 = arith.select %206, %197, %180 : vector<8x128xi1>, vector<8x128xf32>
    %209 = arith.select %206, %199, %181 : vector<8x128xi1>, vector<8x128xf32>
    %210 = arith.select %206, %201, %182 : vector<8x128xi1>, vector<8x128xf32>
    %211 = arith.select %206, %203, %183 : vector<8x128xi1>, vector<8x128xf32>
    %212 = arith.mulf %193, %7 : vector<8x128xf32>
    %213 = arith.addf %212, %195 : vector<8x128xf32>
    %214 = arith.cmpf olt, %213, %187 : vector<8x128xf32>
    %215 = arith.select %214, %213, %187 : vector<8x128xi1>, vector<8x128xf32>
    %216 = arith.select %214, %197, %188 : vector<8x128xi1>, vector<8x128xf32>
    %217 = arith.select %214, %199, %189 : vector<8x128xi1>, vector<8x128xf32>
    %218 = arith.select %214, %201, %190 : vector<8x128xi1>, vector<8x128xf32>
    %219 = arith.select %214, %203, %191 : vector<8x128xi1>, vector<8x128xf32>
    %c8 = arith.constant 8 : index
    %c0_170 = arith.constant 0 : index
    %c0_171 = arith.constant 0 : index
    %220 = vector.load %arg3[%c8, %c0_170, %c0_171] : memref<16x8x128xf32, #tpu.memory_space<vmem>>, vector<1x8x128xf32>
    %221 = vector.shape_cast %220 : vector<1x8x128xf32> to vector<8x128xf32>
    %c8_172 = arith.constant 8 : index
    %c0_173 = arith.constant 0 : index
    %c0_174 = arith.constant 0 : index
    %222 = vector.load %arg4[%c8_172, %c0_173, %c0_174] : memref<16x8x128xf32, #tpu.memory_space<vmem>>, vector<1x8x128xf32>
    %223 = vector.shape_cast %222 : vector<1x8x128xf32> to vector<8x128xf32>
    %c8_175 = arith.constant 8 : index
    %c0_176 = arith.constant 0 : index
    %c0_177 = arith.constant 0 : index
    %c0_178 = arith.constant 0 : index
    %224 = vector.load %arg5[%c8_175, %c0_176, %c0_177, %c0_178] : memref<16x4x8x128xf32, #tpu.memory_space<vmem>>, vector<1x1x8x128xf32>
    %225 = vector.shape_cast %224 : vector<1x1x8x128xf32> to vector<8x128xf32>
    %c8_179 = arith.constant 8 : index
    %c1_180 = arith.constant 1 : index
    %c0_181 = arith.constant 0 : index
    %c0_182 = arith.constant 0 : index
    %226 = vector.load %arg5[%c8_179, %c1_180, %c0_181, %c0_182] : memref<16x4x8x128xf32, #tpu.memory_space<vmem>>, vector<1x1x8x128xf32>
    %227 = vector.shape_cast %226 : vector<1x1x8x128xf32> to vector<8x128xf32>
    %c8_183 = arith.constant 8 : index
    %c2_184 = arith.constant 2 : index
    %c0_185 = arith.constant 0 : index
    %c0_186 = arith.constant 0 : index
    %228 = vector.load %arg5[%c8_183, %c2_184, %c0_185, %c0_186] : memref<16x4x8x128xf32, #tpu.memory_space<vmem>>, vector<1x1x8x128xf32>
    %229 = vector.shape_cast %228 : vector<1x1x8x128xf32> to vector<8x128xf32>
    %c8_187 = arith.constant 8 : index
    %c3_188 = arith.constant 3 : index
    %c0_189 = arith.constant 0 : index
    %c0_190 = arith.constant 0 : index
    %230 = vector.load %arg5[%c8_187, %c3_188, %c0_189, %c0_190] : memref<16x4x8x128xf32, #tpu.memory_space<vmem>>, vector<1x1x8x128xf32>
    %231 = vector.shape_cast %230 : vector<1x1x8x128xf32> to vector<8x128xf32>
    %232 = arith.mulf %221, %6 : vector<8x128xf32>
    %233 = arith.addf %232, %223 : vector<8x128xf32>
    %234 = arith.cmpf olt, %233, %207 : vector<8x128xf32>
    %235 = arith.select %234, %233, %207 : vector<8x128xi1>, vector<8x128xf32>
    %236 = arith.select %234, %225, %208 : vector<8x128xi1>, vector<8x128xf32>
    %237 = arith.select %234, %227, %209 : vector<8x128xi1>, vector<8x128xf32>
    %238 = arith.select %234, %229, %210 : vector<8x128xi1>, vector<8x128xf32>
    %239 = arith.select %234, %231, %211 : vector<8x128xi1>, vector<8x128xf32>
    %240 = arith.mulf %221, %7 : vector<8x128xf32>
    %241 = arith.addf %240, %223 : vector<8x128xf32>
    %242 = arith.cmpf olt, %241, %215 : vector<8x128xf32>
    %243 = arith.select %242, %241, %215 : vector<8x128xi1>, vector<8x128xf32>
    %244 = arith.select %242, %225, %216 : vector<8x128xi1>, vector<8x128xf32>
    %245 = arith.select %242, %227, %217 : vector<8x128xi1>, vector<8x128xf32>
    %246 = arith.select %242, %229, %218 : vector<8x128xi1>, vector<8x128xf32>
    %247 = arith.select %242, %231, %219 : vector<8x128xi1>, vector<8x128xf32>
    %c9 = arith.constant 9 : index
    %c0_191 = arith.constant 0 : index
    %c0_192 = arith.constant 0 : index
    %248 = vector.load %arg3[%c9, %c0_191, %c0_192] : memref<16x8x128xf32, #tpu.memory_space<vmem>>, vector<1x8x128xf32>
    %249 = vector.shape_cast %248 : vector<1x8x128xf32> to vector<8x128xf32>
    %c9_193 = arith.constant 9 : index
    %c0_194 = arith.constant 0 : index
    %c0_195 = arith.constant 0 : index
    %250 = vector.load %arg4[%c9_193, %c0_194, %c0_195] : memref<16x8x128xf32, #tpu.memory_space<vmem>>, vector<1x8x128xf32>
    %251 = vector.shape_cast %250 : vector<1x8x128xf32> to vector<8x128xf32>
    %c9_196 = arith.constant 9 : index
    %c0_197 = arith.constant 0 : index
    %c0_198 = arith.constant 0 : index
    %c0_199 = arith.constant 0 : index
    %252 = vector.load %arg5[%c9_196, %c0_197, %c0_198, %c0_199] : memref<16x4x8x128xf32, #tpu.memory_space<vmem>>, vector<1x1x8x128xf32>
    %253 = vector.shape_cast %252 : vector<1x1x8x128xf32> to vector<8x128xf32>
    %c9_200 = arith.constant 9 : index
    %c1_201 = arith.constant 1 : index
    %c0_202 = arith.constant 0 : index
    %c0_203 = arith.constant 0 : index
    %254 = vector.load %arg5[%c9_200, %c1_201, %c0_202, %c0_203] : memref<16x4x8x128xf32, #tpu.memory_space<vmem>>, vector<1x1x8x128xf32>
    %255 = vector.shape_cast %254 : vector<1x1x8x128xf32> to vector<8x128xf32>
    %c9_204 = arith.constant 9 : index
    %c2_205 = arith.constant 2 : index
    %c0_206 = arith.constant 0 : index
    %c0_207 = arith.constant 0 : index
    %256 = vector.load %arg5[%c9_204, %c2_205, %c0_206, %c0_207] : memref<16x4x8x128xf32, #tpu.memory_space<vmem>>, vector<1x1x8x128xf32>
    %257 = vector.shape_cast %256 : vector<1x1x8x128xf32> to vector<8x128xf32>
    %c9_208 = arith.constant 9 : index
    %c3_209 = arith.constant 3 : index
    %c0_210 = arith.constant 0 : index
    %c0_211 = arith.constant 0 : index
    %258 = vector.load %arg5[%c9_208, %c3_209, %c0_210, %c0_211] : memref<16x4x8x128xf32, #tpu.memory_space<vmem>>, vector<1x1x8x128xf32>
    %259 = vector.shape_cast %258 : vector<1x1x8x128xf32> to vector<8x128xf32>
    %260 = arith.mulf %249, %6 : vector<8x128xf32>
    %261 = arith.addf %260, %251 : vector<8x128xf32>
    %262 = arith.cmpf olt, %261, %235 : vector<8x128xf32>
    %263 = arith.select %262, %261, %235 : vector<8x128xi1>, vector<8x128xf32>
    %264 = arith.select %262, %253, %236 : vector<8x128xi1>, vector<8x128xf32>
    %265 = arith.select %262, %255, %237 : vector<8x128xi1>, vector<8x128xf32>
    %266 = arith.select %262, %257, %238 : vector<8x128xi1>, vector<8x128xf32>
    %267 = arith.select %262, %259, %239 : vector<8x128xi1>, vector<8x128xf32>
    %268 = arith.mulf %249, %7 : vector<8x128xf32>
    %269 = arith.addf %268, %251 : vector<8x128xf32>
    %270 = arith.cmpf olt, %269, %243 : vector<8x128xf32>
    %271 = arith.select %270, %269, %243 : vector<8x128xi1>, vector<8x128xf32>
    %272 = arith.select %270, %253, %244 : vector<8x128xi1>, vector<8x128xf32>
    %273 = arith.select %270, %255, %245 : vector<8x128xi1>, vector<8x128xf32>
    %274 = arith.select %270, %257, %246 : vector<8x128xi1>, vector<8x128xf32>
    %275 = arith.select %270, %259, %247 : vector<8x128xi1>, vector<8x128xf32>
    %c10 = arith.constant 10 : index
    %c0_212 = arith.constant 0 : index
    %c0_213 = arith.constant 0 : index
    %276 = vector.load %arg3[%c10, %c0_212, %c0_213] : memref<16x8x128xf32, #tpu.memory_space<vmem>>, vector<1x8x128xf32>
    %277 = vector.shape_cast %276 : vector<1x8x128xf32> to vector<8x128xf32>
    %c10_214 = arith.constant 10 : index
    %c0_215 = arith.constant 0 : index
    %c0_216 = arith.constant 0 : index
    %278 = vector.load %arg4[%c10_214, %c0_215, %c0_216] : memref<16x8x128xf32, #tpu.memory_space<vmem>>, vector<1x8x128xf32>
    %279 = vector.shape_cast %278 : vector<1x8x128xf32> to vector<8x128xf32>
    %c10_217 = arith.constant 10 : index
    %c0_218 = arith.constant 0 : index
    %c0_219 = arith.constant 0 : index
    %c0_220 = arith.constant 0 : index
    %280 = vector.load %arg5[%c10_217, %c0_218, %c0_219, %c0_220] : memref<16x4x8x128xf32, #tpu.memory_space<vmem>>, vector<1x1x8x128xf32>
    %281 = vector.shape_cast %280 : vector<1x1x8x128xf32> to vector<8x128xf32>
    %c10_221 = arith.constant 10 : index
    %c1_222 = arith.constant 1 : index
    %c0_223 = arith.constant 0 : index
    %c0_224 = arith.constant 0 : index
    %282 = vector.load %arg5[%c10_221, %c1_222, %c0_223, %c0_224] : memref<16x4x8x128xf32, #tpu.memory_space<vmem>>, vector<1x1x8x128xf32>
    %283 = vector.shape_cast %282 : vector<1x1x8x128xf32> to vector<8x128xf32>
    %c10_225 = arith.constant 10 : index
    %c2_226 = arith.constant 2 : index
    %c0_227 = arith.constant 0 : index
    %c0_228 = arith.constant 0 : index
    %284 = vector.load %arg5[%c10_225, %c2_226, %c0_227, %c0_228] : memref<16x4x8x128xf32, #tpu.memory_space<vmem>>, vector<1x1x8x128xf32>
    %285 = vector.shape_cast %284 : vector<1x1x8x128xf32> to vector<8x128xf32>
    %c10_229 = arith.constant 10 : index
    %c3_230 = arith.constant 3 : index
    %c0_231 = arith.constant 0 : index
    %c0_232 = arith.constant 0 : index
    %286 = vector.load %arg5[%c10_229, %c3_230, %c0_231, %c0_232] : memref<16x4x8x128xf32, #tpu.memory_space<vmem>>, vector<1x1x8x128xf32>
    %287 = vector.shape_cast %286 : vector<1x1x8x128xf32> to vector<8x128xf32>
    %288 = arith.mulf %277, %6 : vector<8x128xf32>
    %289 = arith.addf %288, %279 : vector<8x128xf32>
    %290 = arith.cmpf olt, %289, %263 : vector<8x128xf32>
    %291 = arith.select %290, %289, %263 : vector<8x128xi1>, vector<8x128xf32>
    %292 = arith.select %290, %281, %264 : vector<8x128xi1>, vector<8x128xf32>
    %293 = arith.select %290, %283, %265 : vector<8x128xi1>, vector<8x128xf32>
    %294 = arith.select %290, %285, %266 : vector<8x128xi1>, vector<8x128xf32>
    %295 = arith.select %290, %287, %267 : vector<8x128xi1>, vector<8x128xf32>
    %296 = arith.mulf %277, %7 : vector<8x128xf32>
    %297 = arith.addf %296, %279 : vector<8x128xf32>
    %298 = arith.cmpf olt, %297, %271 : vector<8x128xf32>
    %299 = arith.select %298, %297, %271 : vector<8x128xi1>, vector<8x128xf32>
    %300 = arith.select %298, %281, %272 : vector<8x128xi1>, vector<8x128xf32>
    %301 = arith.select %298, %283, %273 : vector<8x128xi1>, vector<8x128xf32>
    %302 = arith.select %298, %285, %274 : vector<8x128xi1>, vector<8x128xf32>
    %303 = arith.select %298, %287, %275 : vector<8x128xi1>, vector<8x128xf32>
    %c11 = arith.constant 11 : index
    %c0_233 = arith.constant 0 : index
    %c0_234 = arith.constant 0 : index
    %304 = vector.load %arg3[%c11, %c0_233, %c0_234] : memref<16x8x128xf32, #tpu.memory_space<vmem>>, vector<1x8x128xf32>
    %305 = vector.shape_cast %304 : vector<1x8x128xf32> to vector<8x128xf32>
    %c11_235 = arith.constant 11 : index
    %c0_236 = arith.constant 0 : index
    %c0_237 = arith.constant 0 : index
    %306 = vector.load %arg4[%c11_235, %c0_236, %c0_237] : memref<16x8x128xf32, #tpu.memory_space<vmem>>, vector<1x8x128xf32>
    %307 = vector.shape_cast %306 : vector<1x8x128xf32> to vector<8x128xf32>
    %c11_238 = arith.constant 11 : index
    %c0_239 = arith.constant 0 : index
    %c0_240 = arith.constant 0 : index
    %c0_241 = arith.constant 0 : index
    %308 = vector.load %arg5[%c11_238, %c0_239, %c0_240, %c0_241] : memref<16x4x8x128xf32, #tpu.memory_space<vmem>>, vector<1x1x8x128xf32>
    %309 = vector.shape_cast %308 : vector<1x1x8x128xf32> to vector<8x128xf32>
    %c11_242 = arith.constant 11 : index
    %c1_243 = arith.constant 1 : index
    %c0_244 = arith.constant 0 : index
    %c0_245 = arith.constant 0 : index
    %310 = vector.load %arg5[%c11_242, %c1_243, %c0_244, %c0_245] : memref<16x4x8x128xf32, #tpu.memory_space<vmem>>, vector<1x1x8x128xf32>
    %311 = vector.shape_cast %310 : vector<1x1x8x128xf32> to vector<8x128xf32>
    %c11_246 = arith.constant 11 : index
    %c2_247 = arith.constant 2 : index
    %c0_248 = arith.constant 0 : index
    %c0_249 = arith.constant 0 : index
    %312 = vector.load %arg5[%c11_246, %c2_247, %c0_248, %c0_249] : memref<16x4x8x128xf32, #tpu.memory_space<vmem>>, vector<1x1x8x128xf32>
    %313 = vector.shape_cast %312 : vector<1x1x8x128xf32> to vector<8x128xf32>
    %c11_250 = arith.constant 11 : index
    %c3_251 = arith.constant 3 : index
    %c0_252 = arith.constant 0 : index
    %c0_253 = arith.constant 0 : index
    %314 = vector.load %arg5[%c11_250, %c3_251, %c0_252, %c0_253] : memref<16x4x8x128xf32, #tpu.memory_space<vmem>>, vector<1x1x8x128xf32>
    %315 = vector.shape_cast %314 : vector<1x1x8x128xf32> to vector<8x128xf32>
    %316 = arith.mulf %305, %6 : vector<8x128xf32>
    %317 = arith.addf %316, %307 : vector<8x128xf32>
    %318 = arith.cmpf olt, %317, %291 : vector<8x128xf32>
    %319 = arith.select %318, %317, %291 : vector<8x128xi1>, vector<8x128xf32>
    %320 = arith.select %318, %309, %292 : vector<8x128xi1>, vector<8x128xf32>
    %321 = arith.select %318, %311, %293 : vector<8x128xi1>, vector<8x128xf32>
    %322 = arith.select %318, %313, %294 : vector<8x128xi1>, vector<8x128xf32>
    %323 = arith.select %318, %315, %295 : vector<8x128xi1>, vector<8x128xf32>
    %324 = arith.mulf %305, %7 : vector<8x128xf32>
    %325 = arith.addf %324, %307 : vector<8x128xf32>
    %326 = arith.cmpf olt, %325, %299 : vector<8x128xf32>
    %327 = arith.select %326, %325, %299 : vector<8x128xi1>, vector<8x128xf32>
    %328 = arith.select %326, %309, %300 : vector<8x128xi1>, vector<8x128xf32>
    %329 = arith.select %326, %311, %301 : vector<8x128xi1>, vector<8x128xf32>
    %330 = arith.select %326, %313, %302 : vector<8x128xi1>, vector<8x128xf32>
    %331 = arith.select %326, %315, %303 : vector<8x128xi1>, vector<8x128xf32>
    %c12 = arith.constant 12 : index
    %c0_254 = arith.constant 0 : index
    %c0_255 = arith.constant 0 : index
    %332 = vector.load %arg3[%c12, %c0_254, %c0_255] : memref<16x8x128xf32, #tpu.memory_space<vmem>>, vector<1x8x128xf32>
    %333 = vector.shape_cast %332 : vector<1x8x128xf32> to vector<8x128xf32>
    %c12_256 = arith.constant 12 : index
    %c0_257 = arith.constant 0 : index
    %c0_258 = arith.constant 0 : index
    %334 = vector.load %arg4[%c12_256, %c0_257, %c0_258] : memref<16x8x128xf32, #tpu.memory_space<vmem>>, vector<1x8x128xf32>
    %335 = vector.shape_cast %334 : vector<1x8x128xf32> to vector<8x128xf32>
    %c12_259 = arith.constant 12 : index
    %c0_260 = arith.constant 0 : index
    %c0_261 = arith.constant 0 : index
    %c0_262 = arith.constant 0 : index
    %336 = vector.load %arg5[%c12_259, %c0_260, %c0_261, %c0_262] : memref<16x4x8x128xf32, #tpu.memory_space<vmem>>, vector<1x1x8x128xf32>
    %337 = vector.shape_cast %336 : vector<1x1x8x128xf32> to vector<8x128xf32>
    %c12_263 = arith.constant 12 : index
    %c1_264 = arith.constant 1 : index
    %c0_265 = arith.constant 0 : index
    %c0_266 = arith.constant 0 : index
    %338 = vector.load %arg5[%c12_263, %c1_264, %c0_265, %c0_266] : memref<16x4x8x128xf32, #tpu.memory_space<vmem>>, vector<1x1x8x128xf32>
    %339 = vector.shape_cast %338 : vector<1x1x8x128xf32> to vector<8x128xf32>
    %c12_267 = arith.constant 12 : index
    %c2_268 = arith.constant 2 : index
    %c0_269 = arith.constant 0 : index
    %c0_270 = arith.constant 0 : index
    %340 = vector.load %arg5[%c12_267, %c2_268, %c0_269, %c0_270] : memref<16x4x8x128xf32, #tpu.memory_space<vmem>>, vector<1x1x8x128xf32>
    %341 = vector.shape_cast %340 : vector<1x1x8x128xf32> to vector<8x128xf32>
    %c12_271 = arith.constant 12 : index
    %c3_272 = arith.constant 3 : index
    %c0_273 = arith.constant 0 : index
    %c0_274 = arith.constant 0 : index
    %342 = vector.load %arg5[%c12_271, %c3_272, %c0_273, %c0_274] : memref<16x4x8x128xf32, #tpu.memory_space<vmem>>, vector<1x1x8x128xf32>
    %343 = vector.shape_cast %342 : vector<1x1x8x128xf32> to vector<8x128xf32>
    %344 = arith.mulf %333, %6 : vector<8x128xf32>
    %345 = arith.addf %344, %335 : vector<8x128xf32>
    %346 = arith.cmpf olt, %345, %319 : vector<8x128xf32>
    %347 = arith.select %346, %345, %319 : vector<8x128xi1>, vector<8x128xf32>
    %348 = arith.select %346, %337, %320 : vector<8x128xi1>, vector<8x128xf32>
    %349 = arith.select %346, %339, %321 : vector<8x128xi1>, vector<8x128xf32>
    %350 = arith.select %346, %341, %322 : vector<8x128xi1>, vector<8x128xf32>
    %351 = arith.select %346, %343, %323 : vector<8x128xi1>, vector<8x128xf32>
    %352 = arith.mulf %333, %7 : vector<8x128xf32>
    %353 = arith.addf %352, %335 : vector<8x128xf32>
    %354 = arith.cmpf olt, %353, %327 : vector<8x128xf32>
    %355 = arith.select %354, %353, %327 : vector<8x128xi1>, vector<8x128xf32>
    %356 = arith.select %354, %337, %328 : vector<8x128xi1>, vector<8x128xf32>
    %357 = arith.select %354, %339, %329 : vector<8x128xi1>, vector<8x128xf32>
    %358 = arith.select %354, %341, %330 : vector<8x128xi1>, vector<8x128xf32>
    %359 = arith.select %354, %343, %331 : vector<8x128xi1>, vector<8x128xf32>
    %c13 = arith.constant 13 : index
    %c0_275 = arith.constant 0 : index
    %c0_276 = arith.constant 0 : index
    %360 = vector.load %arg3[%c13, %c0_275, %c0_276] : memref<16x8x128xf32, #tpu.memory_space<vmem>>, vector<1x8x128xf32>
    %361 = vector.shape_cast %360 : vector<1x8x128xf32> to vector<8x128xf32>
    %c13_277 = arith.constant 13 : index
    %c0_278 = arith.constant 0 : index
    %c0_279 = arith.constant 0 : index
    %362 = vector.load %arg4[%c13_277, %c0_278, %c0_279] : memref<16x8x128xf32, #tpu.memory_space<vmem>>, vector<1x8x128xf32>
    %363 = vector.shape_cast %362 : vector<1x8x128xf32> to vector<8x128xf32>
    %c13_280 = arith.constant 13 : index
    %c0_281 = arith.constant 0 : index
    %c0_282 = arith.constant 0 : index
    %c0_283 = arith.constant 0 : index
    %364 = vector.load %arg5[%c13_280, %c0_281, %c0_282, %c0_283] : memref<16x4x8x128xf32, #tpu.memory_space<vmem>>, vector<1x1x8x128xf32>
    %365 = vector.shape_cast %364 : vector<1x1x8x128xf32> to vector<8x128xf32>
    %c13_284 = arith.constant 13 : index
    %c1_285 = arith.constant 1 : index
    %c0_286 = arith.constant 0 : index
    %c0_287 = arith.constant 0 : index
    %366 = vector.load %arg5[%c13_284, %c1_285, %c0_286, %c0_287] : memref<16x4x8x128xf32, #tpu.memory_space<vmem>>, vector<1x1x8x128xf32>
    %367 = vector.shape_cast %366 : vector<1x1x8x128xf32> to vector<8x128xf32>
    %c13_288 = arith.constant 13 : index
    %c2_289 = arith.constant 2 : index
    %c0_290 = arith.constant 0 : index
    %c0_291 = arith.constant 0 : index
    %368 = vector.load %arg5[%c13_288, %c2_289, %c0_290, %c0_291] : memref<16x4x8x128xf32, #tpu.memory_space<vmem>>, vector<1x1x8x128xf32>
    %369 = vector.shape_cast %368 : vector<1x1x8x128xf32> to vector<8x128xf32>
    %c13_292 = arith.constant 13 : index
    %c3_293 = arith.constant 3 : index
    %c0_294 = arith.constant 0 : index
    %c0_295 = arith.constant 0 : index
    %370 = vector.load %arg5[%c13_292, %c3_293, %c0_294, %c0_295] : memref<16x4x8x128xf32, #tpu.memory_space<vmem>>, vector<1x1x8x128xf32>
    %371 = vector.shape_cast %370 : vector<1x1x8x128xf32> to vector<8x128xf32>
    %372 = arith.mulf %361, %6 : vector<8x128xf32>
    %373 = arith.addf %372, %363 : vector<8x128xf32>
    %374 = arith.cmpf olt, %373, %347 : vector<8x128xf32>
    %375 = arith.select %374, %373, %347 : vector<8x128xi1>, vector<8x128xf32>
    %376 = arith.select %374, %365, %348 : vector<8x128xi1>, vector<8x128xf32>
    %377 = arith.select %374, %367, %349 : vector<8x128xi1>, vector<8x128xf32>
    %378 = arith.select %374, %369, %350 : vector<8x128xi1>, vector<8x128xf32>
    %379 = arith.select %374, %371, %351 : vector<8x128xi1>, vector<8x128xf32>
    %380 = arith.mulf %361, %7 : vector<8x128xf32>
    %381 = arith.addf %380, %363 : vector<8x128xf32>
    %382 = arith.cmpf olt, %381, %355 : vector<8x128xf32>
    %383 = arith.select %382, %381, %355 : vector<8x128xi1>, vector<8x128xf32>
    %384 = arith.select %382, %365, %356 : vector<8x128xi1>, vector<8x128xf32>
    %385 = arith.select %382, %367, %357 : vector<8x128xi1>, vector<8x128xf32>
    %386 = arith.select %382, %369, %358 : vector<8x128xi1>, vector<8x128xf32>
    %387 = arith.select %382, %371, %359 : vector<8x128xi1>, vector<8x128xf32>
    %c14 = arith.constant 14 : index
    %c0_296 = arith.constant 0 : index
    %c0_297 = arith.constant 0 : index
    %388 = vector.load %arg3[%c14, %c0_296, %c0_297] : memref<16x8x128xf32, #tpu.memory_space<vmem>>, vector<1x8x128xf32>
    %389 = vector.shape_cast %388 : vector<1x8x128xf32> to vector<8x128xf32>
    %c14_298 = arith.constant 14 : index
    %c0_299 = arith.constant 0 : index
    %c0_300 = arith.constant 0 : index
    %390 = vector.load %arg4[%c14_298, %c0_299, %c0_300] : memref<16x8x128xf32, #tpu.memory_space<vmem>>, vector<1x8x128xf32>
    %391 = vector.shape_cast %390 : vector<1x8x128xf32> to vector<8x128xf32>
    %c14_301 = arith.constant 14 : index
    %c0_302 = arith.constant 0 : index
    %c0_303 = arith.constant 0 : index
    %c0_304 = arith.constant 0 : index
    %392 = vector.load %arg5[%c14_301, %c0_302, %c0_303, %c0_304] : memref<16x4x8x128xf32, #tpu.memory_space<vmem>>, vector<1x1x8x128xf32>
    %393 = vector.shape_cast %392 : vector<1x1x8x128xf32> to vector<8x128xf32>
    %c14_305 = arith.constant 14 : index
    %c1_306 = arith.constant 1 : index
    %c0_307 = arith.constant 0 : index
    %c0_308 = arith.constant 0 : index
    %394 = vector.load %arg5[%c14_305, %c1_306, %c0_307, %c0_308] : memref<16x4x8x128xf32, #tpu.memory_space<vmem>>, vector<1x1x8x128xf32>
    %395 = vector.shape_cast %394 : vector<1x1x8x128xf32> to vector<8x128xf32>
    %c14_309 = arith.constant 14 : index
    %c2_310 = arith.constant 2 : index
    %c0_311 = arith.constant 0 : index
    %c0_312 = arith.constant 0 : index
    %396 = vector.load %arg5[%c14_309, %c2_310, %c0_311, %c0_312] : memref<16x4x8x128xf32, #tpu.memory_space<vmem>>, vector<1x1x8x128xf32>
    %397 = vector.shape_cast %396 : vector<1x1x8x128xf32> to vector<8x128xf32>
    %c14_313 = arith.constant 14 : index
    %c3_314 = arith.constant 3 : index
    %c0_315 = arith.constant 0 : index
    %c0_316 = arith.constant 0 : index
    %398 = vector.load %arg5[%c14_313, %c3_314, %c0_315, %c0_316] : memref<16x4x8x128xf32, #tpu.memory_space<vmem>>, vector<1x1x8x128xf32>
    %399 = vector.shape_cast %398 : vector<1x1x8x128xf32> to vector<8x128xf32>
    %400 = arith.mulf %389, %6 : vector<8x128xf32>
    %401 = arith.addf %400, %391 : vector<8x128xf32>
    %402 = arith.cmpf olt, %401, %375 : vector<8x128xf32>
    %403 = arith.select %402, %401, %375 : vector<8x128xi1>, vector<8x128xf32>
    %404 = arith.select %402, %393, %376 : vector<8x128xi1>, vector<8x128xf32>
    %405 = arith.select %402, %395, %377 : vector<8x128xi1>, vector<8x128xf32>
    %406 = arith.select %402, %397, %378 : vector<8x128xi1>, vector<8x128xf32>
    %407 = arith.select %402, %399, %379 : vector<8x128xi1>, vector<8x128xf32>
    %408 = arith.mulf %389, %7 : vector<8x128xf32>
    %409 = arith.addf %408, %391 : vector<8x128xf32>
    %410 = arith.cmpf olt, %409, %383 : vector<8x128xf32>
    %411 = arith.select %410, %409, %383 : vector<8x128xi1>, vector<8x128xf32>
    %412 = arith.select %410, %393, %384 : vector<8x128xi1>, vector<8x128xf32>
    %413 = arith.select %410, %395, %385 : vector<8x128xi1>, vector<8x128xf32>
    %414 = arith.select %410, %397, %386 : vector<8x128xi1>, vector<8x128xf32>
    %415 = arith.select %410, %399, %387 : vector<8x128xi1>, vector<8x128xf32>
    %c15 = arith.constant 15 : index
    %c0_317 = arith.constant 0 : index
    %c0_318 = arith.constant 0 : index
    %416 = vector.load %arg3[%c15, %c0_317, %c0_318] : memref<16x8x128xf32, #tpu.memory_space<vmem>>, vector<1x8x128xf32>
    %417 = vector.shape_cast %416 : vector<1x8x128xf32> to vector<8x128xf32>
    %c15_319 = arith.constant 15 : index
    %c0_320 = arith.constant 0 : index
    %c0_321 = arith.constant 0 : index
    %418 = vector.load %arg4[%c15_319, %c0_320, %c0_321] : memref<16x8x128xf32, #tpu.memory_space<vmem>>, vector<1x8x128xf32>
    %419 = vector.shape_cast %418 : vector<1x8x128xf32> to vector<8x128xf32>
    %c15_322 = arith.constant 15 : index
    %c0_323 = arith.constant 0 : index
    %c0_324 = arith.constant 0 : index
    %c0_325 = arith.constant 0 : index
    %420 = vector.load %arg5[%c15_322, %c0_323, %c0_324, %c0_325] : memref<16x4x8x128xf32, #tpu.memory_space<vmem>>, vector<1x1x8x128xf32>
    %421 = vector.shape_cast %420 : vector<1x1x8x128xf32> to vector<8x128xf32>
    %c15_326 = arith.constant 15 : index
    %c1_327 = arith.constant 1 : index
    %c0_328 = arith.constant 0 : index
    %c0_329 = arith.constant 0 : index
    %422 = vector.load %arg5[%c15_326, %c1_327, %c0_328, %c0_329] : memref<16x4x8x128xf32, #tpu.memory_space<vmem>>, vector<1x1x8x128xf32>
    %423 = vector.shape_cast %422 : vector<1x1x8x128xf32> to vector<8x128xf32>
    %c15_330 = arith.constant 15 : index
    %c2_331 = arith.constant 2 : index
    %c0_332 = arith.constant 0 : index
    %c0_333 = arith.constant 0 : index
    %424 = vector.load %arg5[%c15_330, %c2_331, %c0_332, %c0_333] : memref<16x4x8x128xf32, #tpu.memory_space<vmem>>, vector<1x1x8x128xf32>
    %425 = vector.shape_cast %424 : vector<1x1x8x128xf32> to vector<8x128xf32>
    %c15_334 = arith.constant 15 : index
    %c3_335 = arith.constant 3 : index
    %c0_336 = arith.constant 0 : index
    %c0_337 = arith.constant 0 : index
    %426 = vector.load %arg5[%c15_334, %c3_335, %c0_336, %c0_337] : memref<16x4x8x128xf32, #tpu.memory_space<vmem>>, vector<1x1x8x128xf32>
    %427 = vector.shape_cast %426 : vector<1x1x8x128xf32> to vector<8x128xf32>
    %428 = arith.mulf %417, %6 : vector<8x128xf32>
    %429 = arith.addf %428, %419 : vector<8x128xf32>
    %430 = arith.cmpf olt, %429, %403 : vector<8x128xf32>
    %431 = arith.select %430, %421, %404 : vector<8x128xi1>, vector<8x128xf32>
    %432 = arith.select %430, %423, %405 : vector<8x128xi1>, vector<8x128xf32>
    %433 = arith.select %430, %425, %406 : vector<8x128xi1>, vector<8x128xf32>
    %434 = arith.select %430, %427, %407 : vector<8x128xi1>, vector<8x128xf32>
    %435 = arith.mulf %417, %7 : vector<8x128xf32>
    %436 = arith.addf %435, %419 : vector<8x128xf32>
    %437 = arith.cmpf olt, %436, %411 : vector<8x128xf32>
    %438 = arith.select %437, %421, %412 : vector<8x128xi1>, vector<8x128xf32>
    %439 = arith.select %437, %423, %413 : vector<8x128xi1>, vector<8x128xf32>
    %440 = arith.select %437, %425, %414 : vector<8x128xi1>, vector<8x128xf32>
    %441 = arith.select %437, %427, %415 : vector<8x128xi1>, vector<8x128xf32>
    %442 = tpu.concatenate %431, %438 in 1 : vector<8x128xf32>, vector<8x128xf32> -> vector<8x256xf32>
    %443 = tpu.concatenate %432, %439 in 1 : vector<8x128xf32>, vector<8x128xf32> -> vector<8x256xf32>
    %444 = tpu.concatenate %433, %440 in 1 : vector<8x128xf32>, vector<8x128xf32> -> vector<8x256xf32>
    %445 = tpu.concatenate %434, %441 in 1 : vector<8x128xf32>, vector<8x128xf32> -> vector<8x256xf32>
    %446 = vector.shape_cast %442 : vector<8x256xf32> to vector<8x1x256xf32>
    %447 = vector.shape_cast %443 : vector<8x256xf32> to vector<8x1x256xf32>
    %448 = vector.shape_cast %444 : vector<8x256xf32> to vector<8x1x256xf32>
    %449 = vector.shape_cast %445 : vector<8x256xf32> to vector<8x1x256xf32>
    %450 = tpu.concatenate %446, %447, %448, %449 in 1 : vector<8x1x256xf32>, vector<8x1x256xf32>, vector<8x1x256xf32>, vector<8x1x256xf32> -> vector<8x4x256xf32>
    %451 = vector.shape_cast %450 : vector<8x4x256xf32> to vector<32x256xf32>
    %c0_338 = arith.constant 0 : index
    %c0_339 = arith.constant 0 : index
    %452 = arith.index_cast %2 : i32 to index
    %453 = vector.load %arg10[%c0_338, %c0_339, %452] : memref<1x32x256xf32, #tpu.memory_space<vmem>>, vector<1x32x256xf32>
    %454 = vector.shape_cast %453 : vector<1x32x256xf32> to vector<32x256xf32>
    %455 = vector.shape_cast %451 : vector<32x256xf32> to vector<1x32x256xf32>
    tpu.vector_store %arg10[%c0_338, %c0_339, %452], %455 {strides = array<i32>} : memref<1x32x256xf32, #tpu.memory_space<vmem>>, vector<1x32x256xf32>,
    %c0_340 = arith.constant 0 : index
    %c0_341 = arith.constant 0 : index
    %c0_342 = arith.constant 0 : index
    %456 = vector.load %arg8[%c0_340, %c0_341, %c0_342] : memref<4x8x128xf32, #tpu.memory_space<vmem>>, vector<1x8x128xf32>
    %457 = vector.shape_cast %456 : vector<1x8x128xf32> to vector<8x128xf32>
    %c1_343 = arith.constant 1 : index
    %c0_344 = arith.constant 0 : index
    %c0_345 = arith.constant 0 : index
    %458 = vector.load %arg8[%c1_343, %c0_344, %c0_345] : memref<4x8x128xf32, #tpu.memory_space<vmem>>, vector<1x8x128xf32>
    %459 = vector.shape_cast %458 : vector<1x8x128xf32> to vector<8x128xf32>
    %c2_346 = arith.constant 2 : index
    %c0_347 = arith.constant 0 : index
    %c0_348 = arith.constant 0 : index
    %460 = vector.load %arg8[%c2_346, %c0_347, %c0_348] : memref<4x8x128xf32, #tpu.memory_space<vmem>>, vector<1x8x128xf32>
    %461 = vector.shape_cast %460 : vector<1x8x128xf32> to vector<8x128xf32>
    %c3_349 = arith.constant 3 : index
    %c0_350 = arith.constant 0 : index
    %c0_351 = arith.constant 0 : index
    %462 = vector.load %arg8[%c3_349, %c0_350, %c0_351] : memref<4x8x128xf32, #tpu.memory_space<vmem>>, vector<1x8x128xf32>
    %463 = vector.shape_cast %462 : vector<1x8x128xf32> to vector<8x128xf32>
    %c0_352 = arith.constant 0 : index
    %c0_353 = arith.constant 0 : index
    %464 = vector.load %arg9[%c0_352, %c0_353] : memref<8x128xf32, #tpu.memory_space<vmem>>, vector<8x128xf32>
    %465 = arith.mulf %431, %457 : vector<8x128xf32>
    %466 = arith.addf %464, %465 : vector<8x128xf32>
    %467 = arith.mulf %432, %459 : vector<8x128xf32>
    %468 = arith.addf %466, %467 : vector<8x128xf32>
    %469 = arith.mulf %433, %461 : vector<8x128xf32>
    %470 = arith.addf %468, %469 : vector<8x128xf32>
    %471 = arith.mulf %434, %463 : vector<8x128xf32>
    %472 = arith.addf %470, %471 : vector<8x128xf32>
    %473 = arith.mulf %438, %457 : vector<8x128xf32>
    %474 = arith.addf %464, %473 : vector<8x128xf32>
    %475 = arith.mulf %439, %459 : vector<8x128xf32>
    %476 = arith.addf %474, %475 : vector<8x128xf32>
    %477 = arith.mulf %440, %461 : vector<8x128xf32>
    %478 = arith.addf %476, %477 : vector<8x128xf32>
    %479 = arith.mulf %441, %463 : vector<8x128xf32>
    %480 = arith.addf %478, %479 : vector<8x128xf32>
    %481 = tpu.concatenate %472, %480 in 1 : vector<8x128xf32>, vector<8x128xf32> -> vector<8x256xf32>
    %c0_354 = arith.constant 0 : index
    %c0_355 = arith.constant 0 : index
    %482 = arith.index_cast %2 : i32 to index
    %483 = vector.load %arg11[%c0_354, %c0_355, %482] : memref<1x8x256xf32, #tpu.memory_space<vmem>>, vector<1x8x256xf32>
    %484 = vector.shape_cast %483 : vector<1x8x256xf32> to vector<8x256xf32>
    %485 = vector.shape_cast %481 : vector<8x256xf32> to vector<1x8x256xf32>
    tpu.vector_store %arg11[%c0_354, %c0_355, %482], %485 {strides = array<i32>} : memref<1x8x256xf32, #tpu.memory_space<vmem>>, vector<1x8x256xf32>,
    %c0_356 = arith.constant 0 : index
    %c0_357 = arith.constant 0 : index
    %c0_358 = arith.constant 0 : index
    %486 = vector.load %arg6[%c0_356, %c0_357, %c0_358] : memref<4x8x128xf32, #tpu.memory_space<vmem>>, vector<1x8x128xf32>
    %487 = vector.shape_cast %486 : vector<1x8x128xf32> to vector<8x128xf32>
    %c1_359 = arith.constant 1 : index
    %c0_360 = arith.constant 0 : index
    %c0_361 = arith.constant 0 : index
    %488 = vector.load %arg6[%c1_359, %c0_360, %c0_361] : memref<4x8x128xf32, #tpu.memory_space<vmem>>, vector<1x8x128xf32>
    %489 = vector.shape_cast %488 : vector<1x8x128xf32> to vector<8x128xf32>
    %c2_362 = arith.constant 2 : index
    %c0_363 = arith.constant 0 : index
    %c0_364 = arith.constant 0 : index
    %490 = vector.load %arg6[%c2_362, %c0_363, %c0_364] : memref<4x8x128xf32, #tpu.memory_space<vmem>>, vector<1x8x128xf32>
    %491 = vector.shape_cast %490 : vector<1x8x128xf32> to vector<8x128xf32>
    %c3_365 = arith.constant 3 : index
    %c0_366 = arith.constant 0 : index
    %c0_367 = arith.constant 0 : index
    %492 = vector.load %arg6[%c3_365, %c0_366, %c0_367] : memref<4x8x128xf32, #tpu.memory_space<vmem>>, vector<1x8x128xf32>
    %493 = vector.shape_cast %492 : vector<1x8x128xf32> to vector<8x128xf32>
    %c0_368 = arith.constant 0 : index
    %c0_369 = arith.constant 0 : index
    %c0_370 = arith.constant 0 : index
    %494 = vector.load %arg7[%c0_368, %c0_369, %c0_370] : memref<4x8x128xf32, #tpu.memory_space<vmem>>, vector<1x8x128xf32>
    %495 = vector.shape_cast %494 : vector<1x8x128xf32> to vector<8x128xf32>
    %c1_371 = arith.constant 1 : index
    %c0_372 = arith.constant 0 : index
    %c0_373 = arith.constant 0 : index
    %496 = vector.load %arg7[%c1_371, %c0_372, %c0_373] : memref<4x8x128xf32, #tpu.memory_space<vmem>>, vector<1x8x128xf32>
    %497 = vector.shape_cast %496 : vector<1x8x128xf32> to vector<8x128xf32>
    %c2_374 = arith.constant 2 : index
    %c0_375 = arith.constant 0 : index
    %c0_376 = arith.constant 0 : index
    %498 = vector.load %arg7[%c2_374, %c0_375, %c0_376] : memref<4x8x128xf32, #tpu.memory_space<vmem>>, vector<1x8x128xf32>
    %499 = vector.shape_cast %498 : vector<1x8x128xf32> to vector<8x128xf32>
    %c3_377 = arith.constant 3 : index
    %c0_378 = arith.constant 0 : index
    %c0_379 = arith.constant 0 : index
    %500 = vector.load %arg7[%c3_377, %c0_378, %c0_379] : memref<4x8x128xf32, #tpu.memory_space<vmem>>, vector<1x8x128xf32>
    %501 = vector.shape_cast %500 : vector<1x8x128xf32> to vector<8x128xf32>
    %cst_380 = arith.constant 0.000000e+00 : f32
    %502 = vector.broadcast %cst_380 : f32 to vector<8x128xf32>
    %503 = arith.mulf %6, %487 : vector<8x128xf32>
    %504 = arith.addf %503, %495 : vector<8x128xf32>
    %505 = arith.subf %431, %504 : vector<8x128xf32>
    %506 = arith.mulf %505, %505 : vector<8x128xf32>
    %507 = arith.addf %502, %506 : vector<8x128xf32>
    %508 = arith.mulf %6, %489 : vector<8x128xf32>
    %509 = arith.addf %508, %497 : vector<8x128xf32>
    %510 = arith.subf %432, %509 : vector<8x128xf32>
    %511 = arith.mulf %510, %510 : vector<8x128xf32>
    %512 = arith.addf %507, %511 : vector<8x128xf32>
    %513 = arith.mulf %6, %491 : vector<8x128xf32>
    %514 = arith.addf %513, %499 : vector<8x128xf32>
    %515 = arith.subf %433, %514 : vector<8x128xf32>
    %516 = arith.mulf %515, %515 : vector<8x128xf32>
    %517 = arith.addf %512, %516 : vector<8x128xf32>
    %518 = arith.mulf %6, %493 : vector<8x128xf32>
    %519 = arith.addf %518, %501 : vector<8x128xf32>
    %520 = arith.subf %434, %519 : vector<8x128xf32>
    %521 = arith.mulf %520, %520 : vector<8x128xf32>
    %522 = arith.addf %517, %521 : vector<8x128xf32>
    %523 = arith.addf %0, %522 : vector<8x128xf32>
    %cst_381 = arith.constant 0.000000e+00 : f32
    %524 = vector.broadcast %cst_381 : f32 to vector<8x128xf32>
    %525 = arith.mulf %7, %487 : vector<8x128xf32>
    %526 = arith.addf %525, %495 : vector<8x128xf32>
    %527 = arith.subf %438, %526 : vector<8x128xf32>
    %528 = arith.mulf %527, %527 : vector<8x128xf32>
    %529 = arith.addf %524, %528 : vector<8x128xf32>
    %530 = arith.mulf %7, %489 : vector<8x128xf32>
    %531 = arith.addf %530, %497 : vector<8x128xf32>
    %532 = arith.subf %439, %531 : vector<8x128xf32>
    %533 = arith.mulf %532, %532 : vector<8x128xf32>
    %534 = arith.addf %529, %533 : vector<8x128xf32>
    %535 = arith.mulf %7, %491 : vector<8x128xf32>
    %536 = arith.addf %535, %499 : vector<8x128xf32>
    %537 = arith.subf %440, %536 : vector<8x128xf32>
    %538 = arith.mulf %537, %537 : vector<8x128xf32>
    %539 = arith.addf %534, %538 : vector<8x128xf32>
    %540 = arith.mulf %7, %493 : vector<8x128xf32>
    %541 = arith.addf %540, %501 : vector<8x128xf32>
    %542 = arith.subf %441, %541 : vector<8x128xf32>
    %543 = arith.mulf %542, %542 : vector<8x128xf32>
    %544 = arith.addf %539, %543 : vector<8x128xf32>
    %545 = arith.addf %523, %544 : vector<8x128xf32>
    %c1_i32 = arith.constant 1 : i32
    %cst_382 = arith.constant dense<0.000000e+00> : vector<8xf32>
    %546 = vector.multi_reduction <add>, %545, %cst_382 [1] : vector<8x128xf32> to vector<8xf32>
    %547 = vector.shape_cast %546 : vector<8xf32> to vector<8x1xf32>
    %cst_383 = arith.constant dense<0.000000e+00> : vector<1xf32>
    %548 = vector.multi_reduction <add>, %547, %cst_383 [0] : vector<8x1xf32> to vector<1xf32>
    %549 = vector.shape_cast %548 : vector<1xf32> to vector<1x1xf32>
    %cst_384 = arith.constant 0.000000e+00 : f32
    %550 = vector.broadcast %cst_384 : f32 to vector<8x128xf32>
    %551 = vector.broadcast %549 : vector<1x1xf32> to vector<8x128xf32>
    %552 = arith.addf %551, %550 : vector<8x128xf32>
    %c0_385 = arith.constant 0 : index
    %c0_386 = arith.constant 0 : index
    %c0_387 = arith.constant 0 : index
    %c0_388 = arith.constant 0 : index
    %553 = vector.load %arg12[%c0_385, %c0_386, %c0_387, %c0_388] : memref<1x1x8x128xf32, #tpu.memory_space<vmem>>, vector<1x1x8x128xf32>
    %554 = vector.shape_cast %553 : vector<1x1x8x128xf32> to vector<8x128xf32>
    %555 = vector.shape_cast %552 : vector<8x128xf32> to vector<1x1x8x128xf32>
    tpu.vector_store %arg12[%c0_385, %c0_386, %c0_387, %c0_388], %555 {strides = array<i32>} : memref<1x1x8x128xf32, #tpu.memory_space<vmem>>, vector<1x1x8x128xf32>,
    return
  }
  func.func @transform_0(%arg0: i32, %arg1: i32) -> (i32, i32, i32) {
    %c0_i32 = arith.constant 0 : i32
    %c0_i32_0 = arith.constant 0 : i32
    return %arg0, %c0_i32, %arg1 : i32, i32, i32
  }
  func.func @transform_1(%arg0: i32, %arg1: i32) -> (i32, i32, i32) {
    %c0_i32 = arith.constant 0 : i32
    %c0_i32_0 = arith.constant 0 : i32
    %c0_i32_1 = arith.constant 0 : i32
    %c0_i32_2 = arith.constant 0 : i32
    return %c0_i32, %c0_i32_0, %c0_i32_1 : i32, i32, i32
  }
  func.func @transform_2(%arg0: i32, %arg1: i32) -> (i32, i32, i32) {
    %c0_i32 = arith.constant 0 : i32
    %c0_i32_0 = arith.constant 0 : i32
    %c0_i32_1 = arith.constant 0 : i32
    %c0_i32_2 = arith.constant 0 : i32
    return %c0_i32, %c0_i32_0, %c0_i32_1 : i32, i32, i32
  }
  func.func @transform_3(%arg0: i32, %arg1: i32) -> (i32, i32, i32, i32) {
    %c0_i32 = arith.constant 0 : i32
    %c0_i32_0 = arith.constant 0 : i32
    %c0_i32_1 = arith.constant 0 : i32
    %c0_i32_2 = arith.constant 0 : i32
    %c0_i32_3 = arith.constant 0 : i32
    return %c0_i32, %c0_i32_0, %c0_i32_1, %c0_i32_2 : i32, i32, i32, i32
  }
  func.func @transform_4(%arg0: i32, %arg1: i32) -> (i32, i32, i32) {
    %c0_i32 = arith.constant 0 : i32
    %c0_i32_0 = arith.constant 0 : i32
    %c0_i32_1 = arith.constant 0 : i32
    %c0_i32_2 = arith.constant 0 : i32
    return %c0_i32, %c0_i32_0, %c0_i32_1 : i32, i32, i32
  }
  func.func @transform_5(%arg0: i32, %arg1: i32) -> (i32, i32, i32) {
    %c0_i32 = arith.constant 0 : i32
    %c0_i32_0 = arith.constant 0 : i32
    %c0_i32_1 = arith.constant 0 : i32
    %c0_i32_2 = arith.constant 0 : i32
    return %c0_i32, %c0_i32_0, %c0_i32_1 : i32, i32, i32
  }
  func.func @transform_6(%arg0: i32, %arg1: i32) -> (i32, i32, i32) {
    %c0_i32 = arith.constant 0 : i32
    %c0_i32_0 = arith.constant 0 : i32
    %c0_i32_1 = arith.constant 0 : i32
    %c0_i32_2 = arith.constant 0 : i32
    return %c0_i32, %c0_i32_0, %c0_i32_1 : i32, i32, i32
  }
  func.func @transform_7(%arg0: i32, %arg1: i32) -> (i32, i32) {
    %c0_i32 = arith.constant 0 : i32
    %c0_i32_0 = arith.constant 0 : i32
    %c0_i32_1 = arith.constant 0 : i32
    return %c0_i32, %c0_i32_0 : i32, i32
  }
  func.func @transform_8(%arg0: i32, %arg1: i32) -> (i32, i32, i32) {
    %c0_i32 = arith.constant 0 : i32
    %c0_i32_0 = arith.constant 0 : i32
    return %arg0, %c0_i32, %arg1 : i32, i32, i32
  }
  func.func @transform_9(%arg0: i32, %arg1: i32) -> (i32, i32, i32) {
    %c0_i32 = arith.constant 0 : i32
    %c0_i32_0 = arith.constant 0 : i32
    return %arg0, %c0_i32, %arg1 : i32, i32, i32
  }
  func.func @transform_10(%arg0: i32, %arg1: i32) -> (i32, i32, i32, i32) {
    %c0_i32 = arith.constant 0 : i32
    %c0_i32_0 = arith.constant 0 : i32
    %c0_i32_1 = arith.constant 0 : i32
    return %arg0, %arg1, %c0_i32, %c0_i32_0 : i32, i32, i32, i32
  }
}

</mosaic_0001>

<bundles_post_ra>
// kernel: tpu_custom_call.1
= control target key start
LH: loop header
LB: loop body
LE: loop exit
PB: predicated region body
PF: predicated region fallthrough
CT: control target
= control target key end

     0   :  { %s3750_s0 = inlined_call_operand.hbm [shape: f32[2,8,256], index: 0, kind: input, shape index: {}]   ;;  %s3751_s1 = inlined_call_operand.hbm [shape: f32[16,8,128], index: 1, kind: input, shape index: {}]   ;;  %s3752_s2 = inlined_call_operand.hbm [shape: f32[16,8,128], index: 2, kind: input, shape index: {}]   ;;  %s3753_s3 = inlined_call_operand.hbm [shape: f32[16,4,8,128], index: 3, kind: input, shape index: {}]   ;;  %s3754_s4 = inlined_call_operand.hbm [shape: f32[4,8,128], index: 4, kind: input, shape index: {}]   ;;  %s3755_s5 = inlined_call_operand.hbm [shape: f32[4,8,128], index: 5, kind: input, shape index: {}]   ;;  %s3756_s6 = inlined_call_operand.hbm [shape: f32[4,8,128], index: 6, kind: input, shape index: {}]   ;;  %s3757_s7 = inlined_call_operand.vmem [shape: f32[8,128], index: 7, kind: input, shape index: {}]   ;;  %s3758_s8 = inlined_call_operand.hbm [shape: f32[2,32,256], index: 8, kind: output, shape index: {0}]   ;;  %s3759_s9 = inlined_call_operand.hbm [shape: f32[2,8,256], index: 9, kind: output, shape index: {1}]   ;;  %s3760_s10 = inlined_call_operand.hbm [shape: f32[2,1,8,128], index: 10, kind: output, shape index: {2}]  }
   0x1   :  { %3795 = sst [smem:[#allocation45_spill]] %s3750_s0 }
   0x2   :  { %3796 = sst [smem:[#allocation46_spill]] %s3751_s1 }
   0x3   :  { %3797 = sst [smem:[#allocation47_spill]] %s3752_s2 }
   0x4   :  { %3798 = sst [smem:[#allocation48_spill]] %s3758_s8 }
   0x5   :  { %3799 = sst [smem:[#allocation49_spill]] %s3759_s9 }
   0x6   :  { %3800 = sst [smem:[#allocation50_spill]] %s3760_s10 }
   0x7   :  { %16 = vsyncpa [#allocation3], 0 }
   0x8   :  { %18 = vsyncpa [#allocation3 + $0x1], 0 }
   0x9   :  { %19 = vsyncpa [#allocation6], 0 }
   0xa   :  { %20 = vsyncpa [#allocation9], 0 }
   0xb   :  { %21 = vsyncpa [#allocation12], 0 }
   0xc   :  { %22 = vsyncpa [#allocation4], 0 }
   0xd   :  { %24 = vsyncpa [#allocation4 + $0x1], 0 }
   0xe   :  { %25 = vsyncpa [#allocation16], 0 }
   0xf   :  { %27 = vsyncpa [#allocation16 + $0x1], 0  ;;  %s2531_s13 = smov 0   ;;  %s2533_s14 = smov 0  }
  0x10   :  { %s2535_s15 = smov 0   ;;  %s2537_s16 = smov 0  }
  0x11   :  { %s2539_s17 = smov 0   ;;  %s2541_s18 = smov 0  }
  0x12 LB: > { %3801 = sst [smem:[#allocation24_spill]] %s2451_s16  ;;  %s2562_s19 = sadd.s32 4294967295, %s2459_s18   ;;  %s2459_s18 = sphi %s2541_s18, %s33_s18   ;;  %s2455_s17 = sphi %s2539_s17, %s3933_s17   ;;  %s2451_s16 = sphi %s2537_s16, %s3932_s16   ;;  %s2447_s15 = sphi %s2535_s15, %s3931_s15   ;;  %s2443_s14 = sphi %s2533_s14, %s3930_s14   ;;  %s2439_s13 = sphi %s2531_s13, %s3929_s13  }
  0x13   : > { %p1925_p0 = scmp.ge.s32.totalorder %s2459_s18, 1  ;;  %p3765_p1 = scmp.eq.s32.totalorder %s2562_s19, 0 }
  0x14   : > { %p309_p2 = scmp.lt.s32.totalorder %s2459_s18, 3  ;;  %s2461_s21 = smov [#allocation5]  }
  0x15   : > { %s321_s22 = sshll.u32 %s2461_s21, 4  ;;  %s2462_s24 = smov [#allocation8]   ;;  %s2571_s22 = int_to_ptr.vmem [resolvable:$true] %s321_s22 }
  0x16   : > { %p2567_p3 = pnand %p1925_p0, %p309_p2  ;;  %s347_s25 = sshll.u32 %s2462_s24, 4  ;;  %s2582_s25 = int_to_ptr.vmem [resolvable:$true] %s347_s25 }
  0x17   : > { %s2463_s26 = smov [#allocation11]   ;;  %s3804_s1 = sld [smem:[#allocation46_spill]] }
  0x18   : > { %s3802_s20 = scalar_select %p2567_p3, 1, 0 }
  0x19   : > { %p2000_p4 = pneg %p2567_p3  ;;  %s2584_s27 = sshll.u32 %s2463_s26, 4  ;;  %s374_s27 = int_to_ptr.vmem [resolvable:$true] %s2584_s27 }
  0x1b   : > { %p2578_p6 = pnand %p2000_p4, %p3765_p1 }
  0x1d   : > { %s2107_s30 = scalar_lea.hbm %s3804_s1, 2048  ;;  %p2594_p8 = pneg %p2578_p6 }
  0x1e   : > { %p2108_p7 = scmp.ne.s32.totalorder %s3804_s1, %s2107_s30  ;;  %p2114_p11 = scmp.lt.u32.totalorder %s2107_s30, %s3804_s1 }
  0x20   : > { %p2110_p9 = pnand %p2594_p8, %p2108_p7 }
  0x22   : > { %p2111_p10 = pneg %p2110_p9 }
  0x24   : > { %p2116_p12 = pnand %p2114_p11, %p2111_p10 }
  0x26   : > { %2119 = shalt.err (!%p2116_p12)
}
  0x27   : > { %s2120_s28 = scalar_lea.vmem %s2571_s22, 2048  ;;  %p2128_p4 = scmp.lt.s32.totalorder %s2571_s22, %s2571_s22 }
  0x28   : > { %p2121_p13 = scmp.ne.s32.totalorder %s2571_s22, %s2120_s28  ;;  %p2129_p5 = scmp.lt.s32.totalorder %s2120_s28, %s2120_s28 }
  0x2a   : > { %p2123_p0 = pnand %p2121_p13, %p2594_p8  ;;  %p2130_p7 = por %p2129_p5, %p2128_p4 }
  0x2c   : > { %p2124_p2 = pneg %p2123_p0 }
  0x2e   : > { %p2131_p9 = pnand %p2130_p7, %p2124_p2 }
  0x30   : > { %2134 = shalt.err (!%p2131_p9)
}
  0x31   : > { %s2464_s29 = smov 128   ;;  %s2465_s30 = smov 8  }
  0x32   : > { %2003 = dma.hbm_to_vmem [thread:$0]  (!%p2578_p6), %s3804_s1, 2048, %s2571_s22, [#allocation6], %s2464_s29, %s2464_s29, %s2465_s30  }
  0x33   : > { %s2135_s28 = scalar_lea.hbm %s3753_s3, 8192 }
  0x34   : > { %p2136_p5 = scmp.ne.s32.totalorder %s3753_s3, %s2135_s28  ;;  %p2142_p12 = scmp.lt.u32.totalorder %s2135_s28, %s3753_s3 }
  0x36   : > { %p2138_p10 = pnand %p2136_p5, %p2594_p8 }
  0x38   : > { %p2139_p11 = pneg %p2138_p10 }
  0x3a   : > { %p2144_p13 = pnand %p2142_p12, %p2139_p11 }
  0x3c   : > { %2147 = shalt.err (!%p2144_p13)
}
  0x3d   : > { %s2148_s22 = scalar_lea.vmem %s2582_s25, 8192  ;;  %p2156_p7 = scmp.lt.s32.totalorder %s2582_s25, %s2582_s25 }
  0x3e   : > { %p2149_p0 = scmp.ne.s32.totalorder %s2582_s25, %s2148_s22  ;;  %p2157_p9 = scmp.lt.s32.totalorder %s2148_s22, %s2148_s22 }
  0x40   : > { %p2151_p2 = pnand %p2149_p0, %p2594_p8  ;;  %p2158_p5 = por %p2157_p9, %p2156_p7 }
  0x42   : > { %p2152_p4 = pneg %p2151_p2 }
  0x44   : > { %p2159_p10 = pnand %p2158_p5, %p2152_p4 }
  0x46   : > { %2162 = shalt.err (!%p2159_p10)
}
  0x47   : > { %2009 = dma.hbm_to_vmem [thread:$0]  (!%p2578_p6), %s3753_s3, 8192, %s2582_s25, [#allocation9], %s2464_s29, %s2464_s29, %s2465_s30  }
  0x48   : > { %s2163_s11 = scalar_lea.hbm %s3755_s5, 512 }
  0x49   : > { %p2164_p11 = scmp.ne.s32.totalorder %s3755_s5, %s2163_s11  ;;  %p2170_p0 = scmp.lt.u32.totalorder %s2163_s11, %s3755_s5 }
  0x4b   : > { %p2166_p12 = pnand %p2164_p11, %p2594_p8 }
  0x4d   : > { %p2167_p13 = pneg %p2166_p12 }
  0x4f   : > { %p2172_p2 = pnand %p2170_p0, %p2167_p13 }
  0x51   : > { %2175 = shalt.err (!%p2172_p2)
}
  0x52   : > { %s2176_s22 = scalar_lea.vmem %s374_s27, 512  ;;  %p2184_p5 = scmp.lt.s32.totalorder %s374_s27, %s374_s27 }
  0x53   : > { %p2177_p4 = scmp.ne.s32.totalorder %s374_s27, %s2176_s22  ;;  %p2185_p10 = scmp.lt.s32.totalorder %s2176_s22, %s2176_s22 }
  0x55   : > { %p2179_p7 = pnand %p2177_p4, %p2594_p8  ;;  %p2186_p1 = por %p2185_p10, %p2184_p5 }
  0x57   : > { %p2180_p9 = pneg %p2179_p7 }
  0x59   : > { %p2187_p3 = pnand %p2186_p1, %p2180_p9 }
  0x5b   : > { %2190 = shalt.err (!%p2187_p3)
}
  0x5c   : > { %2015 = dma.hbm_to_vmem [thread:$0]  (!%p2578_p6), %s3755_s5, 512, %s374_s27, [#allocation12], %s2464_s29, %s2464_s29, %s2465_s30  }
  0x5d   : > { %s2466_s9 = smov [#allocation7]   ;;  %s2467_s16 = smov [#allocation10]  }
  0x5e   : > { %s334_s10 = sshll.u32 %s2466_s9, 4  ;;  %s360_s11 = sshll.u32 %s2467_s16, 4  ;;  %s335_s10 = int_to_ptr.vmem [resolvable:$true] %s334_s10  ;;  %s361_s11 = int_to_ptr.vmem [resolvable:$true] %s360_s11 }
  0x5f   : > { %s3806_s2 = sld [smem:[#allocation47_spill]] }
  0x65   : > { %s2191_s26 = scalar_lea.hbm %s3806_s2, 2048 }
  0x66   : > { %p2192_p1 = scmp.ne.s32.totalorder %s3806_s2, %s2191_s26  ;;  %p2198_p12 = scmp.lt.u32.totalorder %s2191_s26, %s3806_s2 }
  0x68   : > { %p2194_p3 = pnand %p2192_p1, %p2594_p8 }
  0x6a   : > { %p2195_p11 = pneg %p2194_p3 }
  0x6c   : > { %p2200_p13 = pnand %p2198_p12, %p2195_p11 }
  0x6e   : > { %2203 = shalt.err (!%p2200_p13)
}
  0x6f   : > { %s2204_s27 = scalar_lea.vmem %s335_s10, 2048  ;;  %p2212_p7 = scmp.lt.s32.totalorder %s335_s10, %s335_s10 }
  0x70   : > { %p2205_p0 = scmp.ne.s32.totalorder %s335_s10, %s2204_s27  ;;  %p2213_p9 = scmp.lt.s32.totalorder %s2204_s27, %s2204_s27 }
  0x72   : > { %p2207_p2 = pnand %p2205_p0, %p2594_p8  ;;  %p2214_p5 = por %p2213_p9, %p2212_p7 }
  0x74   : > { %p2208_p4 = pneg %p2207_p2 }
  0x76   : > { %p2215_p10 = pnand %p2214_p5, %p2208_p4 }
  0x78   : > { %2218 = shalt.err (!%p2215_p10)
}
  0x79   : > { %2006 = dma.hbm_to_vmem [thread:$0]  (!%p2578_p6), %s3806_s2, 2048, %s335_s10, [#allocation6], %s2464_s29, %s2464_s29, %s2465_s30  }
  0x7a   : > { %s2219_s12 = scalar_lea.hbm %s3754_s4, 512 }
  0x7b   : > { %p2220_p1 = scmp.ne.s32.totalorder %s3754_s4, %s2219_s12  ;;  %p2226_p12 = scmp.lt.u32.totalorder %s2219_s12, %s3754_s4 }
  0x7d   : > { %p2222_p3 = pnand %p2220_p1, %p2594_p8 }
  0x7f   : > { %p2223_p11 = pneg %p2222_p3 }
  0x81   : > { %p2228_p13 = pnand %p2226_p12, %p2223_p11 }
  0x83   : > { %2231 = shalt.err (!%p2228_p13)
}
  0x84   : > { %s2232_s25 = scalar_lea.vmem %s361_s11, 512  ;;  %p2240_p7 = scmp.lt.s32.totalorder %s361_s11, %s361_s11 }
  0x85   : > { %p2233_p0 = scmp.ne.s32.totalorder %s361_s11, %s2232_s25  ;;  %p2241_p9 = scmp.lt.s32.totalorder %s2232_s25, %s2232_s25 }
  0x87   : > { %p2235_p2 = pnand %p2233_p0, %p2594_p8  ;;  %p2242_p5 = por %p2241_p9, %p2240_p7 }
  0x89   : > { %p2236_p4 = pneg %p2235_p2 }
  0x8b   : > { %p2243_p10 = pnand %p2242_p5, %p2236_p4 }
  0x8d   : > { %2246 = shalt.err (!%p2243_p10)
}
  0x8e   : > { %2012 = dma.hbm_to_vmem [thread:$0]  (!%p2578_p6), %s3754_s4, 512, %s361_s11, [#allocation9], %s2464_s29, %s2464_s29, %s2465_s30  }
  0x8f   : > { %s2468_s1 = smov [#allocation13]   ;;  %s2247_s12 = scalar_lea.hbm %s3756_s6, 512 }
  0x90   : > { %s386_s8 = sshll.u32 %s2468_s1, 4  ;;  %p2248_p1 = scmp.ne.s32.totalorder %s3756_s6, %s2247_s12  ;;  %s387_s8 = int_to_ptr.vmem [resolvable:$true] %s386_s8 }
  0x91   : > { %p2254_p12 = scmp.lt.u32.totalorder %s2247_s12, %s3756_s6 }
  0x92   : > { %p2250_p3 = pnand %p2248_p1, %p2594_p8 }
  0x94   : > { %p2251_p11 = pneg %p2250_p3 }
  0x96   : > { %p2256_p13 = pnand %p2254_p12, %p2251_p11 }
  0x98   : > { %2259 = shalt.err (!%p2256_p13)
}
  0x99   : > { %s2260_s11 = scalar_lea.vmem %s387_s8, 512  ;;  %p2268_p7 = scmp.lt.s32.totalorder %s387_s8, %s387_s8 }
  0x9a   : > { %p2261_p0 = scmp.ne.s32.totalorder %s387_s8, %s2260_s11  ;;  %p2269_p9 = scmp.lt.s32.totalorder %s2260_s11, %s2260_s11 }
  0x9c   : > { %p2263_p2 = pnand %p2261_p0, %p2594_p8  ;;  %p2270_p5 = por %p2269_p9, %p2268_p7 }
  0x9e   : > { %p2264_p4 = pneg %p2263_p2 }
  0xa0   : > { %p2271_p10 = pnand %p2270_p5, %p2264_p4 }
  0xa2   : > { %2274 = shalt.err (!%p2271_p10)
}
  0xa3   : > { %2018 = dma.hbm_to_vmem [thread:$0]  (!%p2578_p6), %s3756_s6, 512, %s387_s8, [#allocation12], %s2464_s29, %s2464_s29, %s2465_s30  }
  0xa4   : > { %s3767_s23 = sadd.s32 4294967294, %s2459_s18   ;;  %s45_s21 = sadd.s32 1, %s2455_s17 }
  0xa5   : > { %p47_p8 = scmp.ge.s32.totalorder %s45_s21, 2  ;;  %s54_s27 = sadd.s32 1, %s2447_s15 }
  0xa6   : > { %p61_p1 = scmp.ne.s32.totalorder %s2447_s15, %s2443_s14  ;;  %p62_p3 = scmp.eq.s32.totalorder %s2459_s18, 0 }
  0xa7   : > { %s3935_s21 = smov (%p47_p8, %s45_s21), 0  ;;  %p67_p12 = scmp.ne.s32.totalorder %s2443_s14, %s2439_s13 }
  0xa8   : > { %p2737_p11 = por %p62_p3, %p61_p1  ;;  %s49_s29 = ssub.s32 %s2455_s17, %s3935_s21 }
  0xa9   : > { %p240_p6 = scmp.eq.s32.totalorder %s2562_s19, 1  ;;  %p52_p13 = scmp.eq.s32.totalorder %s49_s29, 0 }
  0xaa   : > { %p3808_p0 = scmp.eq.s32.totalorder %s2562_s19, 0  ;;  %p246_p7 = scmp.eq.s32.totalorder %s3767_s23, 1 }
  0xab   : > { %p2752_p4 = por %p240_p6, %p61_p1  ;;  %p2039_p5 = scmp.lt.s32.totalorder %s2459_s18, 2 }
  0xac   : > { %p2748_p2 = por %p3808_p0, %p67_p12  ;;  %p2761_p9 = por %p246_p7, %p67_p12 }
  0xad   : > { %s3810_s8 = scalar_select %p2752_p4, 1, 0 }
  0xae   : > { %s2759_s9 = scalar_select %p52_p13, %s2447_s15, %s54_s27  }
  0xaf   : > { %s3811_s16 = scalar_select %p2761_p9, 1, 0 }
  0xb0   : > { %s403_s12 = sand.u32 1, %s2447_s15   ;;  %s1965_s24 = sshll.u32 %s2455_s17, 8 }
  0xb1   : > { %s1933_s26 = sshll.u32 %s403_s12, 4  ;;  %s3812_s0 = sld [smem:[#allocation45_spill]] }
  0xb2   : > { %s407_s25 = scalar_lea.vmem [#allocation2], %s1933_s26  ;;  %p2775_p10 = pnand %p2039_p5, %p2737_p11 }
  0xb3   : > { %s417_s10 = sshll.u32 %s407_s25, 4  ;;  %s404_s29 = scalar_lea.sflag [#allocation3], %s403_s12  ;;  %s2779_s10 = int_to_ptr.vmem [resolvable:$true] %s417_s10 }
  0xb4   : > { %p2277_p1 = pneg %p2775_p10 }
  0xb7   : > { %s2771_s11 = scalar_lea.hbm %s3812_s0, %s1965_s24  ;;  %s2280_s1 = scalar_lea.hbm %s3812_s0, 512 }
  0xb8   : > { %s2275_s23 = scalar_lea.hbm %s2771_s11, 256  ;;  %p2281_p11 = scmp.lt.u32.totalorder %s2771_s11, %s3812_s0 }
  0xb9   : > { %p2276_p8 = scmp.ne.s32.totalorder %s2771_s11, %s2275_s23  ;;  %p2282_p6 = scmp.lt.u32.totalorder %s2280_s1, %s2275_s23 }
  0xba   : > { %p2284_p0 = scmp.lt.u32.totalorder %s2275_s23, %s2771_s11 }
  0xbb   : > { %p2278_p3 = pnand %p2277_p1, %p2276_p8  ;;  %p2283_p13 = por %p2282_p6, %p2281_p11 }
  0xbd   : > { %p2279_p12 = pneg %p2278_p3  ;;  %p2285_p7 = por %p2284_p0, %p2283_p13 }
  0xbf   : > { %p2286_p5 = pnand %p2285_p7, %p2279_p12 }
  0xc1   : > { %2289 = shalt.err (!%p2286_p5)
}
  0xc2   : > { %s2290_s12 = scalar_lea.vmem %s2779_s10, 256  ;;  %s2469_s25 = smov [#allocation2]  }
  0xc3   : > { %p2291_p8 = scmp.ne.s32.totalorder %s2779_s10, %s2290_s12  ;;  %s2295_s24 = sshll.u32 %s2469_s25, 4  ;;  %s2296_s24 = int_to_ptr.vmem [resolvable:$false] %s2295_s24 }
  0xc4   : > { %s2297_s26 = scalar_lea.vmem %s2296_s24, 512  ;;  %p2298_p4 = scmp.lt.s32.totalorder %s2779_s10, %s2296_s24 }
  0xc5   : > { %p2293_p3 = pnand %p2291_p8, %p2277_p1  ;;  %p2299_p11 = scmp.lt.s32.totalorder %s2297_s26, %s2290_s12 }
  0xc7   : > { %p2294_p9 = pneg %p2293_p3  ;;  %p2300_p6 = por %p2299_p11, %p2298_p4 }
  0xc9   : > { %p2301_p13 = pnand %p2300_p6, %p2294_p9 }
  0xcb   : > { %2304 = shalt.err (!%p2301_p13)
}
  0xcc   : > { %2022 = dma.hbm_to_vmem [thread:$0]  (!%p2775_p10), %s2771_s11, 256, %s2779_s10, %s404_s29  }
  0xcd   : > { %p3814_p12 = scmp.ne.s32.totalorder %s3802_s20, 0 }
  0xcf   : > { %426 = sbr.rel (%p3814_p12) target bundleno = 530 (0x212), region = 52 }
  0xd6   : > { %s2809_s23 = sand.u32 1, %s2443_s14  }
  0xd7   : > { %s1937_s1 = sshll.u32 %s2809_s23, 4  ;;  %s429_s28 = scalar_lea.sflag [#allocation3], %s2809_s23 }
  0xd8   : > { %s2815_s22 = scalar_lea.vmem [#allocation2], %s1937_s1 }
  0xd9   : > { %2414 = dma.done.wait (%p2748_p2), %s429_s28, 256  }
  0xda   : > { %2416 = vsyncadd (%p2748_p2), %s429_s28, 4294967040  ;;  %p3815_p4 = scmp.eq.s32.totalorder %s2562_s19, 0 }
  0xdc   : > { %2418 = dma.done.wait (%p3815_p4), [#allocation6], 4096   ;;  %p3816_p9 = pmov %p3815_p4 }
  0xdd   : > { %p3817_p10 = pmov %p3815_p4 }
  0xde   : > { %2420 = vsyncadd (%p3816_p9), [#allocation6], 4294963200 }
  0xdf   : > { %2422 = dma.done.wait (%p3817_p10), [#allocation9], 8704   ;;  %p3818_p1 = pmov %p3815_p4 }
  0xe1   : > { %2424 = vsyncadd (%p3818_p1), [#allocation9], 4294958592  ;;  %p3819_p0 = pmov %p3818_p1 }
  0xe3   : > { %2426 = dma.done.wait (%p3819_p0), [#allocation12], 1024   ;;  %p3820_p7 = pmov %p3819_p0 }
  0xe4   : > { %v2834_v0 = vld [vmem:[%s2815_s22] sm:$0xff]  ;;  %v2837_v1 = vld [vmem:[%s2815_s22 + $0x8] sm:$0xff]  ;;  %v2470_v3 = vmov 1966171168   ;;  %v946_v5 = vlaneseq  ;;  %s1944_s20 = sshll.u32 %s2809_s23, 6  ;;  %s3921_s27 = sld [smem:[#allocation24_spill]] }
  0xe5   : > { %2428 = vsyncadd (%p3820_p7), [#allocation12], 4294966272  ;;  %v508_v2 = vld [vmem:[#allocation5] sm:$0xff]  ;;  %v944_v4 = vunpack.c.l.s4 %v2470_v3  ;;  %v522_v9 = vld [vmem:[#allocation5 + $0x8] sm:$0xff]  ;;  %s3602_s10 = scalar_lea.vmem [#allocation14], %s1944_s20  ;;  %s495_s29 = scalar_lea.vmem [#allocation15], %s1937_s1 }
  0xe6   : > { %v509_v6 = vld [vmem:[#allocation7] sm:$0xff]  ;;  %v510_v7 = vmul.f32 %v508_v2, %v2834_v0  ;;  %v512_v8 = vmul.f32 %v508_v2, %v2837_v1  ;;  %v524_v13 = vld [vmem:[#allocation7 + $0x8] sm:$0xff]  ;;  %v533_v14 = vmul.f32 %v522_v9, %v2834_v0  ;;  %v541_v15 = vmul.f32 %v522_v9, %v2837_v1  ;;  %v518_v17 = vld [vmem:[#allocation8 + $0x10] sm:$0xff]  ;;  %s1663_s12 = sand.u32 1, %s2562_s19   ;;  %s3922_s1 = sld [smem:[#allocation49_spill]] }
  0xe7   : > { %v514_v12 = vld [vmem:[#allocation8] sm:$0xff]  ;;  %v516_v16 = vld [vmem:[#allocation8 + $0x8] sm:$0xff]  ;;  %v550_v18 = vld [vmem:[#allocation5 + $0x10] sm:$0xff]  ;;  %v945_v19 = vunpack.c.0.s8 %v944_v4  ;;  %v947_v20 = vshrl.u32 %v946_v5, 7  ;;  %s3647_s20 = scalar_lea.sflag [#allocation16], %s1663_s12  ;;  %p3923_p5 = scmp.ne.s32.totalorder %s3810_s8, 0 }
  0xe8   : > { %v511_v10 = vadd.f32 %v510_v7, %v509_v6  ;;  %v513_v11 = vadd.f32 %v512_v8, %v509_v6  ;;  %v526_v21 = vld [vmem:[#allocation8 + $0x20] sm:$0xff]  ;;  %v528_v22 = vld [vmem:[#allocation8 + $0x28] sm:$0xff]  ;;  %v534_v23 = vadd.f32 %v533_v14, %v524_v13  ;;  %v542_v24 = vadd.f32 %v541_v15, %v524_v13  ;;  %v552_v25 = vld [vmem:[#allocation7 + $0x10] sm:$0xff]  ;;  %s2471_s11 = smov [#allocation15]  }
  0xe9   : > { %v561_v26 = vmul.f32 %v550_v18, %v2834_v0  ;;  %v569_v27 = vmul.f32 %v550_v18, %v2837_v1  ;;  %v520_v28 = vld [vmem:[#allocation8 + $0x18] sm:$0xff]  ;;  %v530_v29 = vld [vmem:[#allocation8 + $0x30] sm:$0xff]  ;;  %v2845_v31 = vsub.s32 0, %v947_v20  ;;  %v2847_v32 = vsub.s32 1, %v947_v20  ;;  %v554_v40 = vld [vmem:[#allocation8 + $0x40] sm:$0xff]  ;;  %s2309_s0 = sshll.u32 %s2471_s11, 4  ;;  %s2310_s0 = int_to_ptr.vmem [resolvable:$false] %s2309_s0 }
  0xea   : > { %v532_v30 = vld [vmem:[#allocation8 + $0x38] sm:$0xff]  ;;  %vm2849_vm0 = vcmp.lt.f32.partialorder %v534_v23, %v511_v10  ;;  %vm2853_vm1 = vcmp.lt.f32.partialorder %v542_v24, %v513_v11  ;;  %v556_v41 = vld [vmem:[#allocation8 + $0x48] sm:$0xff]  ;;  %v2863_v42 = vsub.s32 %v945_v19, %v947_v20  ;;  %v558_v47 = vld [vmem:[#allocation8 + $0x50] sm:$0xff]  ;;  %s1967_s25 = sshll.u32 %s3921_s27, 8  ;;  %s2311_s2 = scalar_lea.vmem %s2310_s0, 512 }
  0xeb   : > { %v562_v35 = vadd.f32 %v561_v26, %v552_v25  ;;  %v570_v36 = vadd.f32 %v569_v27, %v552_v25  ;;  %v536_v37 = vsel %vm2849_vm0, %v534_v23, %v511_v10  ;;  %v537_v38 = vsel %vm2849_vm0, %v526_v21, %v514_v12  ;;  %v560_v48 = vld [vmem:[#allocation8 + $0x58] sm:$0xff]  ;;  %v606_v57 = vld [vmem:[#allocation5 + $0x20] sm:$0xff]  ;;  %v634_v58 = vld [vmem:[#allocation5 + $0x28] sm:$0xff] }
  0xec   : > { %v538_v39 = vsel %vm2849_vm0, %v528_v22, %v516_v16  ;;  %v539_v43 = vsel %vm2849_vm0, %v530_v29, %v518_v17  ;;  %v540_v44 = vsel %vm2849_vm0, %v532_v30, %v520_v28  ;;  %v544_v45 = vsel %vm2853_vm1, %v542_v24, %v513_v11  ;;  %v578_v52 = vld [vmem:[#allocation5 + $0x18] sm:$0xff]  ;;  %v662_v2 = vld [vmem:[#allocation5 + $0x30] sm:$0xff]  ;;  %v608_v7 = vld [vmem:[#allocation7 + $0x20] sm:$0xff]  ;;  %s3645_s28 = scalar_lea.hbm %s3922_s1, %s1967_s25 }
  0xed   : > { %v545_v46 = vsel %vm2853_vm1, %v526_v21, %v514_v12  ;;  %v546_v49 = vsel %vm2853_vm1, %v528_v22, %v516_v16  ;;  %v547_v50 = vsel %vm2853_vm1, %v530_v29, %v518_v17  ;;  %vm563_vm2 = vcmp.lt.f32.partialorder %v562_v35, %v536_v37  ;;  %v580_v63 = vld [vmem:[#allocation7 + $0x18] sm:$0xff]  ;;  %v636_v8 = vld [vmem:[#allocation7 + $0x28] sm:$0xff]  ;;  %v664_v13 = vld [vmem:[#allocation7 + $0x30] sm:$0xff] }
  0xee   : > { %vm2877_vm3 = vcmp.lt.f32.partialorder %v570_v36, %v544_v45  ;;  %v548_v53 = vsel %vm2853_vm1, %v532_v30, %v520_v28  ;;  %v564_v54 = vsel %vm563_vm2, %v562_v35, %v536_v37  ;;  %v565_v55 = vsel %vm563_vm2, %v554_v40, %v537_v38  ;;  %v582_v14 = vld [vmem:[#allocation8 + $0x60] sm:$0xff]  ;;  %v584_v15 = vld [vmem:[#allocation8 + $0x68] sm:$0xff]  ;;  %v586_v21 = vld [vmem:[#allocation8 + $0x70] sm:$0xff] }
  0xef   : > { %v566_v56 = vsel %vm563_vm2, %v556_v41, %v538_v39  ;;  %v567_v59 = vsel %vm563_vm2, %v558_v47, %v539_v43  ;;  %v568_v60 = vsel %vm563_vm2, %v560_v48, %v540_v44  ;;  %v572_v61 = vsel %vm2877_vm3, %v570_v36, %v544_v45  ;;  %v588_v22 = vld [vmem:[#allocation8 + $0x78] sm:$0xff]  ;;  %v610_v35 = vld [vmem:[#allocation8 + $0x80] sm:$0xff]  ;;  %v612_v36 = vld [vmem:[#allocation8 + $0x88] sm:$0xff] }
  0xf0   : > { %v573_v62 = vsel %vm2877_vm3, %v554_v40, %v545_v46  ;;  %v574_v3 = vsel %vm2877_vm3, %v556_v41, %v546_v49  ;;  %v575_v4 = vsel %vm2877_vm3, %v558_v47, %v547_v50  ;;  %v589_v5 = vmul.f32 %v578_v52, %v2834_v0  ;;  %v614_v43 = vld [vmem:[#allocation8 + $0x90] sm:$0xff]  ;;  %v616_v44 = vld [vmem:[#allocation8 + $0x98] sm:$0xff] }
  0xf1   : > { %v597_v6 = vmul.f32 %v578_v52, %v2837_v1  ;;  %v617_v9 = vmul.f32 %v606_v57, %v2834_v0  ;;  %v625_v10 = vmul.f32 %v606_v57, %v2837_v1  ;;  %v645_v11 = vmul.f32 %v634_v58, %v2834_v0  ;;  %v638_v52 = vld [vmem:[#allocation8 + $0xa0] sm:$0xff] }
  0xf2   : > { %v653_v12 = vmul.f32 %v634_v58, %v2837_v1  ;;  %v590_v16 = vadd.f32 %v589_v5, %v580_v63  ;;  %v673_v18 = vmul.f32 %v662_v2, %v2834_v0  ;;  %v681_v19 = vmul.f32 %v662_v2, %v2837_v1  ;;  %v642_v58 = vld [vmem:[#allocation8 + $0xb0] sm:$0xff] }
  0xf3   : > { %v598_v17 = vadd.f32 %v597_v6, %v580_v63  ;;  %v576_v20 = vsel %vm2877_vm3, %v560_v48, %v548_v53  ;;  %v618_v23 = vadd.f32 %v617_v9, %v608_v7  ;;  %v626_v24 = vadd.f32 %v625_v10, %v608_v7  ;;  %v640_v53 = vld [vmem:[#allocation8 + $0xa8] sm:$0xff]  ;;  %v666_v6 = vld [vmem:[#allocation8 + $0xc0] sm:$0xff] }
  0xf4   : > { %v646_v25 = vadd.f32 %v645_v11, %v636_v8  ;;  %vm2901_vm4 = vcmp.lt.f32.partialorder %v590_v16, %v564_v54  ;;  %v654_v28 = vadd.f32 %v653_v12, %v636_v8  ;;  %v674_v29 = vadd.f32 %v673_v18, %v664_v13  ;;  %v668_v7 = vld [vmem:[#allocation8 + $0xc8] sm:$0xff]  ;;  %v670_v12 = vld [vmem:[#allocation8 + $0xd0] sm:$0xff]  ;;  %v722_v63 = vld [vmem:[#allocation8 + $0x100] sm:$0xff] }
  0xf5   : > { %vm2905_vm5 = vcmp.lt.f32.partialorder %v598_v17, %v572_v61  ;;  %v592_v30 = vsel %vm2901_vm4, %v590_v16, %v564_v54  ;;  %v593_v33 = vsel %vm2901_vm4, %v582_v14, %v565_v55  ;;  %v594_v34 = vsel %vm2901_vm4, %v584_v15, %v566_v56 }
  0xf6   : > { %v682_v37 = vadd.f32 %v681_v19, %v664_v13  ;;  %v595_v38 = vsel %vm2901_vm4, %v586_v21, %v567_v59  ;;  %v596_v39 = vsel %vm2901_vm4, %v588_v22, %v568_v60  ;;  %v600_v40 = vsel %vm2905_vm5, %v598_v17, %v572_v61  ;;  %v644_v59 = vld [vmem:[#allocation8 + $0xb8] sm:$0xff] }
  0xf7   : > { %v601_v41 = vsel %vm2905_vm5, %v582_v14, %v573_v62  ;;  %v602_v45 = vsel %vm2905_vm5, %v584_v15, %v574_v3  ;;  %v603_v46 = vsel %vm2905_vm5, %v586_v21, %v575_v4  ;;  %vm619_vm6 = vcmp.lt.f32.partialorder %v618_v23, %v592_v30  ;;  %v672_v13 = vld [vmem:[#allocation8 + $0xd8] sm:$0xff] }
  0xf8   : > { %vm2927_vm7 = vcmp.lt.f32.partialorder %v626_v24, %v600_v40  ;;  %v604_v48 = vsel %vm2905_vm5, %v588_v22, %v576_v20  ;;  %v620_v49 = vsel %vm619_vm6, %v618_v23, %v592_v30  ;;  %v621_v50 = vsel %vm619_vm6, %v610_v35, %v593_v33  ;;  %v690_v17 = vld [vmem:[#allocation5 + $0x38] sm:$0xff]  ;;  %v718_v22 = vld [vmem:[#allocation5 + $0x40] sm:$0xff]  ;;  %v746_v23 = vld [vmem:[#allocation5 + $0x48] sm:$0xff] }
  0xf9   : > { %v622_v51 = vsel %vm619_vm6, %v612_v36, %v594_v34  ;;  %v623_v54 = vsel %vm619_vm6, %v614_v43, %v595_v38  ;;  %v624_v55 = vsel %vm619_vm6, %v616_v44, %v596_v39  ;;  %v628_v56 = vsel %vm2927_vm7, %v626_v24, %v600_v40  ;;  %v774_v30 = vld [vmem:[#allocation5 + $0x50] sm:$0xff]  ;;  %v748_v38 = vld [vmem:[#allocation7 + $0x48] sm:$0xff] }
  0xfa   : > { %v629_v57 = vsel %vm2927_vm7, %v610_v35, %v601_v41  ;;  %v630_v60 = vsel %vm2927_vm7, %v612_v36, %v602_v45  ;;  %v631_v61 = vsel %vm2927_vm7, %v614_v43, %v603_v46  ;;  %vm2941_vm8 = vcmp.lt.f32.partialorder %v646_v25, %v620_v49  ;;  %v720_v36 = vld [vmem:[#allocation7 + $0x40] sm:$0xff]  ;;  %v776_v43 = vld [vmem:[#allocation7 + $0x50] sm:$0xff]  ;;  %v696_v45 = vld [vmem:[#allocation8 + $0xe8] sm:$0xff] }
  0xfb   : > { %vm2945_vm9 = vcmp.lt.f32.partialorder %v654_v28, %v628_v56  ;;  %v632_v2 = vsel %vm2927_vm7, %v616_v44, %v604_v48  ;;  %v648_v3 = vsel %vm2941_vm8, %v646_v25, %v620_v49  ;;  %v649_v4 = vsel %vm2941_vm8, %v638_v52, %v621_v50  ;;  %v694_v44 = vld [vmem:[#allocation8 + $0xe0] sm:$0xff] }
  0xfc   : > { %v650_v5 = vsel %vm2941_vm8, %v640_v53, %v622_v51  ;;  %v651_v8 = vsel %vm2941_vm8, %v642_v58, %v623_v54  ;;  %v652_v9 = vsel %vm2941_vm8, %v644_v59, %v624_v55  ;;  %v656_v10 = vsel %vm2945_vm9, %v654_v28, %v628_v56  ;;  %v692_v28 = vld [vmem:[#allocation7 + $0x38] sm:$0xff]  ;;  %v698_v51 = vld [vmem:[#allocation8 + $0xf0] sm:$0xff] }
  0xfd   : > { %v657_v11 = vsel %vm2945_vm9, %v638_v52, %v629_v57  ;;  %v658_v14 = vsel %vm2945_vm9, %v640_v53, %v630_v60  ;;  %v659_v15 = vsel %vm2945_vm9, %v642_v58, %v631_v61  ;;  %vm675_vm10 = vcmp.lt.f32.partialorder %v674_v29, %v648_v3  ;;  %v700_v52 = vld [vmem:[#allocation8 + $0xf8] sm:$0xff] }
  0xfe   : > { %vm2969_vm11 = vcmp.lt.f32.partialorder %v682_v37, %v656_v10  ;;  %v660_v18 = vsel %vm2945_vm9, %v644_v59, %v632_v2  ;;  %v676_v19 = vsel %vm675_vm10, %v674_v29, %v648_v3  ;;  %v677_v20 = vsel %vm675_vm10, %v666_v6, %v649_v4  ;;  %v724_v2 = vld [vmem:[#allocation8 + $0x108] sm:$0xff] }
  0xff   : > { %v678_v21 = vsel %vm675_vm10, %v668_v7, %v650_v5  ;;  %v679_v24 = vsel %vm675_vm10, %v670_v12, %v651_v8  ;;  %v680_v25 = vsel %vm675_vm10, %v672_v13, %v652_v9  ;;  %v684_v26 = vsel %vm2969_vm11, %v682_v37, %v656_v10  ;;  %v726_v8 = vld [vmem:[#allocation8 + $0x110] sm:$0xff]  ;;  %v728_v9 = vld [vmem:[#allocation8 + $0x118] sm:$0xff] }
 0x100   : > { %v685_v27 = vsel %vm2969_vm11, %v666_v6, %v657_v11  ;;  %v686_v33 = vsel %vm2969_vm11, %v668_v7, %v658_v14  ;;  %v687_v29 = vsel %vm2969_vm11, %v670_v12, %v659_v15  ;;  %v701_v34 = vmul.f32 %v690_v17, %v2834_v0 }
 0x101   : > { %v709_v35 = vmul.f32 %v690_v17, %v2837_v1  ;;  %v729_v39 = vmul.f32 %v718_v22, %v2834_v0  ;;  %v737_v37 = vmul.f32 %v718_v22, %v2837_v1  ;;  %v757_v40 = vmul.f32 %v746_v23, %v2834_v0  ;;  %v750_v17 = vld [vmem:[#allocation8 + $0x120] sm:$0xff] }
 0x102   : > { %v765_v41 = vmul.f32 %v746_v23, %v2837_v1  ;;  %v702_v46 = vadd.f32 %v701_v34, %v692_v28  ;;  %v785_v48 = vmul.f32 %v774_v30, %v2834_v0  ;;  %v793_v49 = vmul.f32 %v774_v30, %v2837_v1  ;;  %v754_v23 = vld [vmem:[#allocation8 + $0x130] sm:$0xff] }
 0x103   : > { %v710_v47 = vadd.f32 %v709_v35, %v692_v28  ;;  %v688_v50 = vsel %vm2969_vm11, %v672_v13, %v660_v18  ;;  %v730_v53 = vadd.f32 %v729_v39, %v720_v36  ;;  %v738_v54 = vadd.f32 %v737_v37, %v720_v36  ;;  %v752_v18 = vld [vmem:[#allocation8 + $0x128] sm:$0xff]  ;;  %v778_v35 = vld [vmem:[#allocation8 + $0x140] sm:$0xff] }
 0x104   : > { %v758_v55 = vadd.f32 %v757_v40, %v748_v38  ;;  %vm2993_vm12 = vcmp.lt.f32.partialorder %v702_v46, %v676_v19  ;;  %v766_v58 = vadd.f32 %v765_v41, %v748_v38  ;;  %v786_v59 = vadd.f32 %v785_v48, %v776_v43  ;;  %v780_v36 = vld [vmem:[#allocation8 + $0x148] sm:$0xff]  ;;  %v782_v41 = vld [vmem:[#allocation8 + $0x150] sm:$0xff]  ;;  %v834_v28 = vld [vmem:[#allocation8 + $0x180] sm:$0xff] }
 0x105   : > { %vm2997_vm13 = vcmp.lt.f32.partialorder %v710_v47, %v684_v26  ;;  %v704_v60 = vsel %vm2993_vm12, %v702_v46, %v676_v19  ;;  %v705_v61 = vsel %vm2993_vm12, %v694_v44, %v677_v20  ;;  %v706_v62 = vsel %vm2993_vm12, %v696_v45, %v678_v21 }
 0x106   : > { %v794_v3 = vadd.f32 %v793_v49, %v776_v43  ;;  %v707_v4 = vsel %vm2993_vm12, %v698_v51, %v679_v24  ;;  %v708_v5 = vsel %vm2993_vm12, %v700_v52, %v680_v25  ;;  %v712_v6 = vsel %vm2997_vm13, %v710_v47, %v684_v26  ;;  %v756_v24 = vld [vmem:[#allocation8 + $0x138] sm:$0xff] }
 0x107   : > { %v713_v7 = vsel %vm2997_vm13, %v694_v44, %v685_v27  ;;  %v714_v10 = vsel %vm2997_vm13, %v696_v45, %v686_v33  ;;  %v715_v11 = vsel %vm2997_vm13, %v698_v51, %v687_v29  ;;  %vm731_vm14 = vcmp.lt.f32.partialorder %v730_v53, %v704_v60  ;;  %v784_v43 = vld [vmem:[#allocation8 + $0x158] sm:$0xff] }
 0x108   : > { %vm3019_vm15 = vcmp.lt.f32.partialorder %v738_v54, %v712_v6  ;;  %v716_v13 = vsel %vm2997_vm13, %v700_v52, %v688_v50  ;;  %v732_v14 = vsel %vm731_vm14, %v730_v53, %v704_v60  ;;  %v733_v15 = vsel %vm731_vm14, %v722_v63, %v705_v61  ;;  %v802_v47 = vld [vmem:[#allocation5 + $0x58] sm:$0xff]  ;;  %v830_v52 = vld [vmem:[#allocation5 + $0x60] sm:$0xff]  ;;  %v858_v53 = vld [vmem:[#allocation5 + $0x68] sm:$0xff] }
 0x109   : > { %v734_v16 = vsel %vm731_vm14, %v724_v2, %v706_v62  ;;  %v735_v19 = vsel %vm731_vm14, %v726_v8, %v707_v4  ;;  %v736_v20 = vsel %vm731_vm14, %v728_v9, %v708_v5  ;;  %v740_v21 = vsel %vm3019_vm15, %v738_v54, %v712_v6  ;;  %v886_v60 = vld [vmem:[#allocation5 + $0x70] sm:$0xff]  ;;  %v860_v4 = vld [vmem:[#allocation7 + $0x68] sm:$0xff] }
 0x10a   : > { %v741_v22 = vsel %vm3019_vm15, %v722_v63, %v713_v7  ;;  %v742_v25 = vsel %vm3019_vm15, %v724_v2, %v714_v10  ;;  %v743_v26 = vsel %vm3019_vm15, %v726_v8, %v715_v11  ;;  %vm3033_vm0 = vcmp.lt.f32.partialorder %v758_v55, %v732_v14  ;;  %v832_v2 = vld [vmem:[#allocation7 + $0x60] sm:$0xff]  ;;  %v888_v8 = vld [vmem:[#allocation7 + $0x70] sm:$0xff]  ;;  %v808_v10 = vld [vmem:[#allocation8 + $0x168] sm:$0xff] }
 0x10b   : > { %vm3037_vm1 = vcmp.lt.f32.partialorder %v766_v58, %v740_v21  ;;  %v744_v30 = vsel %vm3019_vm15, %v728_v9, %v716_v13  ;;  %v760_v33 = vsel %vm3033_vm0, %v758_v55, %v732_v14  ;;  %v761_v29 = vsel %vm3033_vm0, %v750_v17, %v733_v15  ;;  %v806_v9 = vld [vmem:[#allocation8 + $0x160] sm:$0xff] }
 0x10c   : > { %v762_v34 = vsel %vm3033_vm0, %v752_v18, %v734_v16  ;;  %v763_v38 = vsel %vm3033_vm0, %v754_v23, %v735_v19  ;;  %v764_v39 = vsel %vm3033_vm0, %v756_v24, %v736_v20  ;;  %v768_v37 = vsel %vm3037_vm1, %v766_v58, %v740_v21  ;;  %v804_v58 = vld [vmem:[#allocation7 + $0x58] sm:$0xff]  ;;  %v810_v16 = vld [vmem:[#allocation8 + $0x170] sm:$0xff] }
 0x10d   : > { %v769_v40 = vsel %vm3037_vm1, %v750_v17, %v741_v22  ;;  %v770_v44 = vsel %vm3037_vm1, %v752_v18, %v742_v25  ;;  %v771_v45 = vsel %vm3037_vm1, %v754_v23, %v743_v26  ;;  %vm787_vm2 = vcmp.lt.f32.partialorder %v786_v59, %v760_v33  ;;  %v812_v17 = vld [vmem:[#allocation8 + $0x178] sm:$0xff] }
 0x10e   : > { %vm3061_vm3 = vcmp.lt.f32.partialorder %v794_v3, %v768_v37  ;;  %v772_v48 = vsel %vm3037_vm1, %v756_v24, %v744_v30  ;;  %v788_v49 = vsel %vm787_vm2, %v786_v59, %v760_v33  ;;  %v789_v50 = vsel %vm787_vm2, %v778_v35, %v761_v29  ;;  %v836_v30 = vld [vmem:[#allocation8 + $0x188] sm:$0xff] }
 0x10f   : > { %v790_v51 = vsel %vm787_vm2, %v780_v36, %v762_v34  ;;  %v791_v54 = vsel %vm787_vm2, %v782_v41, %v763_v38  ;;  %v792_v55 = vsel %vm787_vm2, %v784_v43, %v764_v39  ;;  %v796_v56 = vsel %vm3061_vm3, %v794_v3, %v768_v37  ;;  %v838_v38 = vld [vmem:[#allocation8 + $0x190] sm:$0xff]  ;;  %v840_v39 = vld [vmem:[#allocation8 + $0x198] sm:$0xff] }
 0x110   : > { %v797_v57 = vsel %vm3061_vm3, %v778_v35, %v769_v40  ;;  %v798_v61 = vsel %vm3061_vm3, %v780_v36, %v770_v44  ;;  %v799_v59 = vsel %vm3061_vm3, %v782_v41, %v771_v45  ;;  %v813_v62 = vmul.f32 %v802_v47, %v2834_v0  ;;  %v920_v41 = vld [vmem:[#allocation8 + $0x1e8] sm:$0xff] }
 0x111   : > { %v821_v63 = vmul.f32 %v802_v47, %v2837_v1  ;;  %v841_v5 = vmul.f32 %v830_v52, %v2834_v0  ;;  %v849_v3 = vmul.f32 %v830_v52, %v2837_v1  ;;  %v869_v6 = vmul.f32 %v858_v53, %v2834_v0  ;;  %v862_v47 = vld [vmem:[#allocation8 + $0x1a0] sm:$0xff] }
 0x112   : > { %v877_v7 = vmul.f32 %v858_v53, %v2837_v1  ;;  %v814_v11 = vadd.f32 %v813_v62, %v804_v58  ;;  %v897_v13 = vmul.f32 %v886_v60, %v2834_v0  ;;  %v905_v14 = vmul.f32 %v886_v60, %v2837_v1  ;;  %v866_v53 = vld [vmem:[#allocation8 + $0x1b0] sm:$0xff] }
 0x113   : > { %v822_v12 = vadd.f32 %v821_v63, %v804_v58  ;;  %v800_v15 = vsel %vm3061_vm3, %v784_v43, %v772_v48  ;;  %v842_v18 = vadd.f32 %v841_v5, %v832_v2  ;;  %v850_v19 = vadd.f32 %v849_v3, %v832_v2  ;;  %v864_v48 = vld [vmem:[#allocation8 + $0x1a8] sm:$0xff]  ;;  %v890_v63 = vld [vmem:[#allocation8 + $0x1c0] sm:$0xff] }
 0x114   : > { %v870_v20 = vadd.f32 %v869_v6, %v860_v4  ;;  %vm3085_vm4 = vcmp.lt.f32.partialorder %v814_v11, %v788_v49  ;;  %v878_v23 = vadd.f32 %v877_v7, %v860_v4  ;;  %v3093_v24 = vadd.f32 %v897_v13, %v888_v8  ;;  %v892_v2 = vld [vmem:[#allocation8 + $0x1c8] sm:$0xff]  ;;  %v894_v7 = vld [vmem:[#allocation8 + $0x1d0] sm:$0xff]  ;;  %v914_v13 = vld [vmem:[#allocation5 + $0x78] sm:$0xff] }
 0x115   : > { %vm3089_vm5 = vcmp.lt.f32.partialorder %v822_v12, %v796_v56  ;;  %v816_v25 = vsel %vm3085_vm4, %v814_v11, %v788_v49  ;;  %v817_v26 = vsel %vm3085_vm4, %v806_v9, %v789_v50  ;;  %v818_v27 = vsel %vm3085_vm4, %v808_v10, %v790_v51 }
 0x116   : > { %v3101_v33 = vadd.f32 %v905_v14, %v888_v8  ;;  %v819_v29 = vsel %vm3085_vm4, %v810_v16, %v791_v54  ;;  %v820_v34 = vsel %vm3085_vm4, %v812_v17, %v792_v55  ;;  %v824_v35 = vsel %vm3089_vm5, %v822_v12, %v796_v56  ;;  %v868_v54 = vld [vmem:[#allocation8 + $0x1b8] sm:$0xff] }
 0x117   : > { %v825_v36 = vsel %vm3089_vm5, %v806_v9, %v797_v57  ;;  %v826_v37 = vsel %vm3089_vm5, %v808_v10, %v798_v61  ;;  %v827_v40 = vsel %vm3089_vm5, %v810_v16, %v799_v59  ;;  %vm843_vm6 = vcmp.lt.f32.partialorder %v842_v18, %v816_v25  ;;  %v896_v8 = vld [vmem:[#allocation8 + $0x1d8] sm:$0xff] }
 0x118   : > { %vm3115_vm7 = vcmp.lt.f32.partialorder %v850_v19, %v824_v35  ;;  %v828_v43 = vsel %vm3089_vm5, %v812_v17, %v800_v15  ;;  %v844_v44 = vsel %vm843_vm6, %v842_v18, %v816_v25  ;;  %v845_v45 = vsel %vm843_vm6, %v834_v28, %v817_v26  ;;  %v1592_v18 = vld [vmem:[#allocation10] sm:$0xff]  ;;  %v916_v25 = vld [vmem:[#allocation7 + $0x78] sm:$0xff] }
 0x119   : > { %v846_v46 = vsel %vm843_vm6, %v836_v30, %v818_v27  ;;  %v847_v49 = vsel %vm843_vm6, %v838_v38, %v819_v29  ;;  %v848_v50 = vsel %vm843_vm6, %v840_v39, %v820_v34  ;;  %v852_v51 = vsel %vm3115_vm7, %v850_v19, %v824_v35  ;;  %v1594_v19 = vld [vmem:[#allocation10 + $0x8] sm:$0xff]  ;;  %v3187_v26 = vld [vmem:[#allocation10 + $0x18] sm:$0xff]  ;;  %v1599_v34 = vld [vmem:[#allocation11] sm:$0xff] }
 0x11a   : > { %v853_v52 = vsel %vm3115_vm7, %v834_v28, %v825_v36  ;;  %v854_v55 = vsel %vm3115_vm7, %v836_v30, %v826_v37  ;;  %v855_v56 = vsel %vm3115_vm7, %v838_v38, %v827_v40  ;;  %vm3129_vm8 = vcmp.lt.f32.partialorder %v870_v20, %v844_v44  ;;  %3866 = vst [vmem:[#allocation26_spill] sm:$0xff] %v3187_v26  ;;  %v1601_v35 = vld [vmem:[#allocation11 + $0x8] sm:$0xff]  ;;  %v3195_v36 = vld [vmem:[#allocation11 + $0x10] sm:$0xff]  ;;  %v918_v38 = vld [vmem:[#allocation8 + $0x1e0] sm:$0xff] }
 0x11b   : > { %vm3133_vm9 = vcmp.lt.f32.partialorder %v878_v23, %v852_v51  ;;  %v856_v60 = vsel %vm3115_vm7, %v840_v39, %v828_v43  ;;  %v872_v61 = vsel %vm3129_vm8, %v870_v20, %v844_v44  ;;  %v873_v59 = vsel %vm3129_vm8, %v862_v47, %v845_v45  ;;  %v3176_v20 = vld [vmem:[#allocation10 + $0x10] sm:$0xff]  ;;  %3867 = vst [vmem:[#allocation27_spill] sm:$0xff] %v3195_v36  ;;  %v924_v44 = vld [vmem:[#allocation8 + $0x1f8] sm:$0xff] }
 0x11c   : > { %v874_v62 = vsel %vm3129_vm8, %v864_v48, %v846_v46  ;;  %v875_v4 = vsel %vm3129_vm8, %v866_v53, %v847_v49  ;;  %v876_v5 = vsel %vm3129_vm8, %v868_v54, %v848_v50  ;;  %v880_v3 = vsel %vm3133_vm9, %v878_v23, %v852_v51  ;;  %3865 = vst [vmem:[#allocation25_spill] sm:$0xff] %v3176_v20  ;;  %v922_v43 = vld [vmem:[#allocation8 + $0x1f0] sm:$0xff] }
 0x11d   : > { %v881_v6 = vsel %vm3133_vm9, %v862_v47, %v853_v52  ;;  %v882_v9 = vsel %vm3133_vm9, %v864_v48, %v854_v55  ;;  %v883_v10 = vsel %vm3133_vm9, %v866_v53, %v855_v56  ;;  %vm3158_vm10 = vcmp.lt.f32.partialorder %v3093_v24, %v872_v61 }
 0x11e   : > { %vm3163_vm11 = vcmp.lt.f32.partialorder %v3101_v33, %v880_v3  ;;  %v884_v14 = vsel %vm3133_vm9, %v868_v54, %v856_v60  ;;  %v900_v15 = vsel %vm3158_vm10, %v3093_v24, %v872_v61  ;;  %v901_v16 = vsel %vm3158_vm10, %v890_v63, %v873_v59 }
 0x11f   : > { %v902_v17 = vsel %vm3158_vm10, %v892_v2, %v874_v62  ;;  %v903_v21 = vsel %vm3158_vm10, %v894_v7, %v875_v4  ;;  %v904_v22 = vsel %vm3158_vm10, %v896_v8, %v876_v5  ;;  %v908_v23 = vsel %vm3163_vm11, %v3101_v33, %v880_v3 }
 0x120   : > { %v909_v24 = vsel %vm3163_vm11, %v890_v63, %v881_v6  ;;  %v910_v27 = vsel %vm3163_vm11, %v892_v2, %v882_v9  ;;  %v911_v28 = vsel %vm3163_vm11, %v894_v7, %v883_v10  ;;  %v925_v30 = vmul.f32 %v914_v13, %v2834_v0 }
 0x121   : > { %v932_v29 = vmul.f32 %v914_v13, %v2837_v1  ;;  %v912_v33 = vsel %vm3163_vm11, %v896_v8, %v884_v14  ;;  %v1606_v39 = vmul.f32 %v1592_v18, %v2834_v0  ;;  %v1611_v37 = vmul.f32 %v1594_v19, %v2834_v0 }
 0x122   : > { %v1616_v40 = vmul.f32 %v3176_v20, %v2834_v0  ;;  %v926_v45 = vadd.f32 %v925_v30, %v916_v25  ;;  %v1627_v47 = vmul.f32 %v1592_v18, %v2837_v1  ;;  %v1632_v48 = vmul.f32 %v1594_v19, %v2837_v1 }
 0x123   : > { %v933_v46 = vadd.f32 %v932_v29, %v916_v25  ;;  %v3205_v49 = vadd.f32 %v1606_v39, %v1599_v34  ;;  %v3207_v50 = vadd.f32 %v1611_v37, %v1601_v35  ;;  %v3214_v52 = vmul.f32 %v3187_v26, %v2834_v0 }
 0x124   : > { %v3210_v51 = vadd.f32 %v1616_v40, %v3195_v36  ;;  %vm927_vm12 = vcmp.lt.f32.partialorder %v926_v45, %v900_v15  ;;  %v3216_v53 = vadd.f32 %v1627_v47, %v1599_v34  ;;  %v3218_v54 = vadd.f32 %v1632_v48, %v1601_v35 }
 0x125   : > { %3868 = vst [vmem:[#allocation28_spill] sm:$0xff] %v3205_v49  ;;  %3869 = vst [vmem:[#allocation29_spill] sm:$0xff] %v3207_v50  ;;  %vm934_vm13 = vcmp.lt.f32.partialorder %v933_v46, %v908_v23  ;;  %v3220_v55 = vsel %vm927_vm12, %v918_v38, %v901_v16  ;;  %v3222_v1 = vsel %vm927_vm12, %v920_v41, %v902_v17  ;;  %vm1467_vm14 = vcmask 1040384  }
 0x126   : > { %3870 = vst [vmem:[#allocation30_spill] sm:$0xff] %v3210_v51  ;;  %3871 = vst [vmem:[#allocation31_spill] sm:$0xff] %v3214_v52  ;;  %v3224_v56 = vsel %vm927_vm12, %v922_v43, %v903_v21  ;;  %v3226_v57 = vsel %vm927_vm12, %v924_v44, %v904_v22  ;;  %v3228_v58 = vsel %vm934_vm13, %v918_v38, %v909_v24  ;;  %vm1484_vm15 = vcmask 1041408  }
 0x127   : > { %3872 = vst [vmem:[#allocation32_spill] sm:$0xff] %v3216_v53  ;;  %3873 = vst [vmem:[#allocation33_spill] sm:$0xff] %v3218_v54  ;;  %v3230_v60 = vsel %vm934_vm13, %v920_v41, %v910_v27  ;;  %v3232_v0 = vsel %vm934_vm13, %v922_v43, %v911_v28  ;;  %v3234_v61 = vsel %vm934_vm13, %v924_v44, %v912_v33  ;;  %vm1501_vm0 = vcmask 1042432  }
 0x128   : > { %3874 = vst [vmem:[#allocation34_spill] sm:$0xff] %v3220_v55  ;;  %3875 = vst [vmem:[#allocation35_spill] sm:$0xff] %v3222_v1  ;;  %v941_v59 = vcombine.low %v3220_v55, %v3228_v58  ;;  %v942_v62 = vcombine.high %v3220_v55, %v3228_v58  ;;  %v993_v63 = vcombine.low %v3222_v1, %v3230_v60 }
 0x129   : > { %3876 = vst [vmem:[#allocation36_spill] sm:$0xff] %v3224_v56  ;;  %3877 = vst [vmem:[#allocation37_spill] sm:$0xff] %v3226_v57  ;;  %v994_v2 = vcombine.high %v3222_v1, %v3230_v60  ;;  %v1045_v4 = vcombine.low %v3224_v56, %v3232_v0  ;;  %v1046_v5 = vcombine.high %v3224_v56, %v3232_v0 }
 0x12a   : > { %3878 = vst [vmem:[#allocation38_spill] sm:$0xff] %v3228_v58  ;;  %3879 = vst [vmem:[#allocation39_spill] sm:$0xff] %v3230_v60  ;;  %v1097_v3 = vcombine.low %v3226_v57, %v3234_v61  ;;  %v1098_v6 = vcombine.high %v3226_v57, %v3234_v61  ;;  %v949_v7 = vrot.slane %v941_v59, %v2863_v42 }
 0x12b   : > { %3880 = vst [vmem:[#allocation40_spill] sm:$0xff] %v3232_v0  ;;  %3881 = vst [vmem:[#allocation41_spill] sm:$0xff] %v3234_v61  ;;  %v956_v8 = vrot.slane %v942_v62, %v2863_v42  ;;  %v1001_v9 = vrot.slane %v993_v63, %v2863_v42  ;;  %v1008_v10 = vrot.slane %v994_v2, %v2863_v42 }
 0x12c   : > { %v1053_v11 = vrot.slane %v1045_v4, %v2863_v42  ;;  %v1060_v12 = vrot.slane %v1046_v5, %v2863_v42  ;;  %v1105_v13 = vrot.slane %v1097_v3, %v2863_v42  ;;  %v1112_v14 = vrot.slane %v1098_v6, %v2863_v42 }
 0x12d   : > { %v957_v15 = vcombine.high %v949_v7, %v949_v7  ;;  %v958_v16 = vcombine.high %v956_v8, %v956_v8  ;;  %v3261_v17 = vrot.slane %v949_v7, %v2863_v42  ;;  %v3264_v18 = vrot.slane %v956_v8, %v2863_v42 }
 0x12e   : > { %v1009_v19 = vcombine.high %v1001_v9, %v1001_v9  ;;  %v1010_v21 = vcombine.high %v1008_v10, %v1008_v10  ;;  %v3267_v22 = vrot.slane %v1001_v9, %v2863_v42  ;;  %v3270_v23 = vrot.slane %v1008_v10, %v2863_v42 }
 0x12f   : > { %v3273_v24 = vrot.slane %v957_v15, %v2863_v42  ;;  %v3276_v25 = vrot.slane %v958_v16, %v2863_v42  ;;  %v3280_v27 = vcombine.high %v3261_v17, %v3261_v17  ;;  %v3284_v28 = vcombine.high %v3264_v18, %v3264_v18 }
 0x130   : > { %v3287_v30 = vrot.slane %v1009_v19, %v2863_v42  ;;  %v3290_v29 = vrot.slane %v1010_v21, %v2863_v42  ;;  %v3294_v34 = vcombine.high %v3267_v22, %v3267_v22  ;;  %v3298_v35 = vcombine.high %v3270_v23, %v3270_v23 }
 0x131   : > { %3882 = vst [vmem:[#allocation42_spill] sm:$0xff] %v3276_v25  ;;  %3883 = vst [vmem:[#allocation43_spill] sm:$0xff] %v3284_v28  ;;  %v3302_v33 = vcombine.high %v3273_v24, %v3273_v24  ;;  %v3306_v38 = vcombine.high %v3276_v25, %v3276_v25  ;;  %v1061_v39 = vcombine.high %v1053_v11, %v1053_v11 }
 0x132   : > { %v1062_v37 = vcombine.high %v1060_v12, %v1060_v12  ;;  %v3310_v40 = vcombine.high %v3287_v30, %v3287_v30  ;;  %v3314_v41 = vcombine.high %v3290_v29, %v3290_v29  ;;  %v3317_v43 = vrot.slane %v1053_v11, %v2863_v42 }
 0x133   : > { %3884 = vst [vmem:[#allocation44_spill] sm:$0xff] %v3306_v38  ;;  %v3320_v44 = vrot.slane %v1060_v12, %v2863_v42  ;;  %v3323_v45 = vrot.slane %v1061_v39, %v2863_v42  ;;  %v1113_v47 = vcombine.high %v1105_v13, %v1105_v13  ;;  %v1114_v48 = vcombine.high %v1112_v14, %v1112_v14 }
 0x134   : > { %v3326_v46 = vrot.slane %v1062_v37, %v2863_v42  ;;  %v3330_v59 = vcombine.high %v3317_v43, %v3317_v43  ;;  %v3337_v63 = vrot.slane %v1105_v13, %v2863_v42  ;;  %v3340_v2 = vrot.slane %v1112_v14, %v2863_v42 }
 0x135   : > { %v3334_v62 = vcombine.high %v3320_v44, %v3320_v44  ;;  %v3344_v4 = vcombine.high %v3323_v45, %v3323_v45  ;;  %v3351_v3 = vrot.slane %v1113_v47, %v2863_v42  ;;  %v3354_v6 = vrot.slane %v1114_v48, %v2863_v42 }
 0x136   : > { %v3348_v5 = vcombine.high %v3326_v46, %v3326_v46  ;;  %v3358_v7 = vcombine.high %v3337_v63, %v3337_v63  ;;  %v3362_v8 = vcombine.high %v3340_v2, %v3340_v2  ;;  %v1230_v39 = vrot.slane %v3267_v22, %v2845_v31 }
 0x137   : > { %v3370_v11 = vcombine.high %v3351_v3, %v3351_v3  ;;  %v3374_v42 = vcombine.high %v3354_v6, %v3354_v6  ;;  %v1234_v37 = vrot.slane %v3267_v22, %v2847_v32  ;;  %v1238_v47 = vrot.slane %v3287_v30, %v2845_v31 }
 0x138   : > { %v1242_v48 = vrot.slane %v3287_v30, %v2847_v32  ;;  %v1246_v16 = vrot.slane %v3294_v34, %v2845_v31  ;;  %v1250_v19 = vrot.slane %v3294_v34, %v2847_v32  ;;  %v1254_v21 = vrot.slane %v3310_v40, %v2845_v31 }
 0x139   : > { %v1258_v15 = vrot.slane %v3310_v40, %v2847_v32  ;;  %v1262_v22 = vrot.slane %v3270_v23, %v2845_v31  ;;  %v1266_v14 = vrot.slane %v3270_v23, %v2847_v32  ;;  %v1270_v30 = vrot.slane %v3290_v29, %v2845_v31 }
 0x13a   : > { %v1274_v13 = vrot.slane %v3290_v29, %v2847_v32  ;;  %v1278_v34 = vrot.slane %v3298_v35, %v2845_v31  ;;  %v1282_v12 = vrot.slane %v3298_v35, %v2847_v32  ;;  %v1286_v40 = vrot.slane %v3314_v41, %v2845_v31 }
 0x13b   : > { %v1290_v10 = vrot.slane %v3314_v41, %v2847_v32  ;;  %v1310_v23 = vrot.slane %v3317_v43, %v2845_v31  ;;  %v1314_v9 = vrot.slane %v3317_v43, %v2847_v32  ;;  %v1318_v29 = vrot.slane %v3323_v45, %v2845_v31 }
 0x13c   : > { %v1322_v36 = vrot.slane %v3323_v45, %v2847_v32  ;;  %v1326_v35 = vrot.slane %v3330_v59, %v2845_v31  ;;  %v1330_v26 = vrot.slane %v3330_v59, %v2847_v32  ;;  %v1334_v41 = vrot.slane %v3344_v4, %v2845_v31 }
 0x13d   : > { %v1338_v20 = vrot.slane %v3344_v4, %v2847_v32  ;;  %v1342_v43 = vrot.slane %v3320_v44, %v2845_v31  ;;  %v1346_v54 = vrot.slane %v3320_v44, %v2847_v32  ;;  %v1350_v45 = vrot.slane %v3326_v46, %v2845_v31 }
 0x13e   : > { %v1354_v53 = vrot.slane %v3326_v46, %v2847_v32  ;;  %v1358_v59 = vrot.slane %v3334_v62, %v2845_v31  ;;  %v1362_v61 = vrot.slane %v3334_v62, %v2847_v32  ;;  %v1366_v4 = vrot.slane %v3348_v5, %v2845_v31 }
 0x13f   : > { %v1370_v51 = vrot.slane %v3348_v5, %v2847_v32  ;;  %v1390_v44 = vrot.slane %v3337_v63, %v2845_v31  ;;  %v1394_v50 = vrot.slane %v3337_v63, %v2847_v32  ;;  %v1398_v46 = vrot.slane %v3351_v3, %v2845_v31 }
 0x140   : > { %v1402_v49 = vrot.slane %v3351_v3, %v2847_v32  ;;  %v1406_v62 = vrot.slane %v3358_v7, %v2845_v31  ;;  %v1410_v0 = vrot.slane %v3358_v7, %v2847_v32  ;;  %v1414_v5 = vrot.slane %v3370_v11, %v2845_v31 }
 0x141   : > { %v1418_v60 = vrot.slane %v3370_v11, %v2847_v32  ;;  %v1422_v63 = vrot.slane %v3340_v2, %v2845_v31  ;;  %v1426_v58 = vrot.slane %v3340_v2, %v2847_v32  ;;  %v1430_v3 = vrot.slane %v3354_v6, %v2845_v31 }
 0x142   : > { %v1434_v57 = vrot.slane %v3354_v6, %v2847_v32  ;;  %v1438_v7 = vrot.slane %v3362_v8, %v2845_v31  ;;  %v1442_v52 = vrot.slane %v3362_v8, %v2847_v32  ;;  %v1446_v11 = vrot.slane %v3374_v42, %v2845_v31 }
 0x143   : > { %v1450_v56 = vrot.slane %v3374_v42, %v2847_v32  ;;  %v3885_v2 = vrot.slane %v3261_v17, %v2845_v31  ;;  %v3886_v6 = vrot.slane %v3261_v17, %v2847_v32  ;;  %v3887_v38 = vrot.slane %v3273_v24, %v2845_v31 }
 0x144   : > { %v3888_v28 = vrot.slane %v3273_v24, %v2847_v32  ;;  %v3889_v25 = vrot.slane %v3280_v27, %v2845_v31  ;;  %v3890_v17 = vrot.slane %v3280_v27, %v2847_v32  ;;  %v3892_v24 = vrot.slane %v3302_v33, %v2847_v32 }
 0x145   : > { %v1468_v1 = vsel %vm1467_vm14, %v3885_v2, %v1230_v39  ;;  %v1469_v55 = vsel %vm1467_vm14, %v3886_v6, %v1234_v37  ;;  %v1470_v8 = vsel %vm1467_vm14, %v3887_v38, %v1238_v47  ;;  %v3891_v2 = vrot.slane %v3302_v33, %v2845_v31  ;;  %v3898_v6 = vld [vmem:[#allocation43_spill] sm:$0xff] }
 0x146   : > { %v1471_v42 = vsel %vm1467_vm14, %v3888_v28, %v1242_v48  ;;  %v1472_v39 = vsel %vm1467_vm14, %v3889_v25, %v1246_v16  ;;  %v1473_v37 = vsel %vm1467_vm14, %v3890_v17, %v1250_v19  ;;  %v1475_v28 = vsel %vm1467_vm14, %v3892_v24, %v1258_v15  ;;  %v3895_v19 = vld [vmem:[#allocation42_spill] sm:$0xff] }
 0x147   : > { %v1474_v38 = vsel %vm1467_vm14, %v3891_v2, %v1254_v21  ;;  %v3893_v47 = vrot.slane %v3264_v18, %v2845_v31  ;;  %v3894_v27 = vrot.slane %v3264_v18, %v2847_v32  ;;  %v3896_v48 = vrot.slane %v3895_v19, %v2845_v31  ;;  %v3901_v2 = vld [vmem:[#allocation44_spill] sm:$0xff] }
 0x148   : > { %v3897_v33 = vrot.slane %v3895_v19, %v2847_v32  ;;  %v3899_v17 = vrot.slane %v3898_v6, %v2845_v31  ;;  %v3900_v18 = vrot.slane %v3898_v6, %v2847_v32  ;;  %v3902_v24 = vrot.slane %v3901_v2, %v2845_v31  ;;  %v3908_v6 = vld [vmem:[#allocation37_spill] sm:$0xff] }
 0x149   : > { %v1476_v25 = vsel %vm1467_vm14, %v3893_v47, %v1262_v22  ;;  %v1477_v16 = vsel %vm1467_vm14, %v3894_v27, %v1266_v14  ;;  %v1478_v21 = vsel %vm1467_vm14, %v3896_v48, %v1270_v30  ;;  %v3903_v47 = vrot.slane %v3901_v2, %v2847_v32 }
 0x14a   : > { %v1479_v15 = vsel %vm1467_vm14, %v3897_v33, %v1274_v13  ;;  %v1480_v22 = vsel %vm1467_vm14, %v3899_v17, %v1278_v34  ;;  %v1481_v14 = vsel %vm1467_vm14, %v3900_v18, %v1282_v12  ;;  %v1482_v30 = vsel %vm1467_vm14, %v3902_v24, %v1286_v40  ;;  %v3911_v24 = vld [vmem:[#allocation40_spill] sm:$0xff] }
 0x14b   : > { %v1483_v13 = vsel %vm1467_vm14, %v3903_v47, %v1290_v10  ;;  %v1485_v27 = vsel %vm1484_vm15, %v1468_v1, %v1310_v23  ;;  %v1486_v34 = vsel %vm1484_vm15, %v1469_v55, %v1314_v9  ;;  %v1487_v19 = vsel %vm1484_vm15, %v1470_v8, %v1318_v29 }
 0x14c   : > { %v1488_v48 = vsel %vm1484_vm15, %v1471_v42, %v1322_v36  ;;  %v1489_v12 = vsel %vm1484_vm15, %v1472_v39, %v1326_v35  ;;  %v1490_v31 = vsel %vm1484_vm15, %v1473_v37, %v1330_v26  ;;  %v1491_v40 = vsel %vm1484_vm15, %v1474_v38, %v1334_v41 }
 0x14d   : > { %v1492_v33 = vsel %vm1484_vm15, %v1475_v28, %v1338_v20  ;;  %v1493_v32 = vsel %vm1484_vm15, %v1476_v25, %v1342_v43  ;;  %v1494_v10 = vsel %vm1484_vm15, %v1477_v16, %v1346_v54  ;;  %v1495_v1 = vsel %vm1484_vm15, %v1478_v21, %v1350_v45  ;;  %v3906_v25 = vld [vmem:[#allocation36_spill] sm:$0xff]  ;;  %v3907_v21 = vld [vmem:[#allocation31_spill] sm:$0xff] }
 0x14e   : > { %v1496_v55 = vsel %vm1484_vm15, %v1479_v15, %v1354_v53  ;;  %v1497_v9 = vsel %vm1484_vm15, %v1480_v22, %v1358_v59  ;;  %v1498_v36 = vsel %vm1484_vm15, %v1481_v14, %v1362_v61  ;;  %v1499_v23 = vsel %vm1484_vm15, %v1482_v30, %v1366_v4  ;;  %v1566_v4 = vld [vmem:[#allocation13] sm:$0xff]  ;;  %v3909_v22 = vld [vmem:[#allocation38_spill] sm:$0xff] }
 0x14f   : > { %v1500_v26 = vsel %vm1484_vm15, %v1483_v13, %v1370_v51  ;;  %v1502_v29 = vsel %vm1501_vm0, %v1485_v27, %v1390_v44  ;;  %v1503_v20 = vsel %vm1501_vm0, %v1486_v34, %v1394_v50  ;;  %v1504_v35 = vsel %vm1501_vm0, %v1487_v19, %v1398_v46  ;;  %v3910_v14 = vld [vmem:[#allocation39_spill] sm:$0xff]  ;;  %v3912_v13 = vld [vmem:[#allocation28_spill] sm:$0xff]  ;;  %v3913_v34 = vld [vmem:[#allocation29_spill] sm:$0xff] }
 0x150   : > { %v1505_v54 = vsel %vm1501_vm0, %v1488_v48, %v1402_v49  ;;  %v1506_v41 = vsel %vm1501_vm0, %v1489_v12, %v1406_v62  ;;  %v1507_v53 = vsel %vm1501_vm0, %v1490_v31, %v1410_v0  ;;  %v1508_v43 = vsel %vm1501_vm0, %v1491_v40, %v1414_v5  ;;  %v1568_v62 = vld [vmem:[#allocation13 + $0x8] sm:$0xff]  ;;  %v1605_v5 = vld [vmem:[#allocation11 + $0x18] sm:$0xff]  ;;  %v3915_v40 = vld [vmem:[#allocation41_spill] sm:$0xff] }
 0x151   : > { %v1509_v61 = vsel %vm1501_vm0, %v1492_v33, %v1418_v60  ;;  %v1510_v45 = vsel %vm1501_vm0, %v1493_v32, %v1422_v63  ;;  %v1511_v51 = vsel %vm1501_vm0, %v1494_v10, %v1426_v58  ;;  %v1512_v59 = vsel %vm1501_vm0, %v1495_v1, %v1430_v3  ;;  %v1570_v60 = vld [vmem:[#allocation13 + $0x10] sm:$0xff]  ;;  %v1572_v3 = vld [vmem:[#allocation13 + $0x18] sm:$0xff]  ;;  %v3916_v32 = vld [vmem:[#allocation32_spill] sm:$0xff] }
 0x152   : > { %v1513_v50 = vsel %vm1501_vm0, %v1496_v55, %v1434_v57  ;;  %v1514_v44 = vsel %vm1501_vm0, %v1497_v9, %v1438_v7  ;;  %v1515_v49 = vsel %vm1501_vm0, %v1498_v36, %v1442_v52  ;;  %v1516_v0 = vsel %vm1501_vm0, %v1499_v23, %v1446_v11  ;;  %v1573_v52 = vld [vmem:[%s3757_s7] sm:$0xff]  ;;  %v3914_v48 = vld [vmem:[#allocation30_spill] sm:$0xff]  ;;  %v3917_v1 = vld [vmem:[#allocation33_spill] sm:$0xff] }
 0x153   : > { %v1517_v46 = vsel %vm1501_vm0, %v1500_v26, %v1450_v56  ;;  %v1947_v63 = vcombine.low %v1502_v29, %v1504_v35  ;;  %v1948_v8 = vcombine.low %v1503_v20, %v1505_v54  ;;  %v1949_v58 = vcombine.low %v1506_v41, %v1508_v43  ;;  %v3904_v56 = vld [vmem:[#allocation34_spill] sm:$0xff]  ;;  %v3905_v11 = vld [vmem:[#allocation35_spill] sm:$0xff] }
 0x154   : > { %v1950_v42 = vcombine.low %v1507_v53, %v1509_v61  ;;  %v1951_v39 = vcombine.low %v1510_v45, %v1512_v59  ;;  %v1952_v57 = vcombine.low %v1511_v51, %v1513_v50  ;;  %v1953_v37 = vcombine.low %v1514_v44, %v1516_v0  ;;  %v2106_v43 = vld [vmem:[%s2815_s22 + $0x8] sm:$0xff]  ;;  %v3918_v61 = vld [vmem:[#allocation25_spill] sm:$0xff]  ;;  %v3920_v44 = vld [vmem:[#allocation27_spill] sm:$0xff]  ;;  %s1703_s22 = sshll.u32 %s495_s29, 4  ;;  %s1704_s22 = int_to_ptr.vmem [resolvable:$true] %s1703_s22 }
 0x155   : > { %v1954_v38 = vcombine.low %v1515_v49, %v1517_v46  ;;  %1558 = vst [vmem:[%s3602_s10] sm:$0xff] %v1947_v63  ;;  %1559 = vst [vmem:[%s3602_s10 + $0x8] sm:$0xff] %v1948_v8  ;;  %v1574_v7 = vmul.f32 %v1566_v4, %v3904_v56  ;;  %v1576_v28 = vmul.f32 %v1568_v62, %v3905_v11  ;;  %v3919_v51 = vld [vmem:[#allocation26_spill] sm:$0xff]  ;;  %s2305_s30 = scalar_lea.vmem %s1704_s22, 256  ;;  %p2312_p11 = scmp.lt.s32.totalorder %s1704_s22, %s2310_s0 }
 0x156   : > { %1560 = vst [vmem:[%s3602_s10 + $0x10] sm:$0xff] %v1949_v58  ;;  %1561 = vst [vmem:[%s3602_s10 + $0x18] sm:$0xff] %v1950_v42  ;;  %v1578_v16 = vmul.f32 %v1570_v60, %v3906_v25  ;;  %v1622_v15 = vadd.f32 %v3907_v21, %v1605_v5  ;;  %v1580_v17 = vmul.f32 %v1572_v3, %v3908_v6  ;;  %p2306_p2 = scmp.ne.s32.totalorder %s1704_s22, %s2305_s30  ;;  %p2313_p6 = scmp.lt.s32.totalorder %s2311_s2, %s2305_s30 }
 0x157   : > { %1562 = vst [vmem:[%s3602_s10 + $0x20] sm:$0xff] %v1951_v39  ;;  %1563 = vst [vmem:[%s3602_s10 + $0x28] sm:$0xff] %v1952_v57  ;;  %v1582_v18 = vmul.f32 %v1566_v4, %v3909_v22  ;;  %v1584_v2 = vmul.f32 %v1568_v62, %v3910_v14  ;;  %v1586_v30 = vmul.f32 %v1570_v60, %v3911_v24 }
 0x158   : > { %1564 = vst [vmem:[%s3602_s10 + $0x30] sm:$0xff] %v1953_v37  ;;  %1565 = vst [vmem:[%s3602_s10 + $0x38] sm:$0xff] %v1954_v38  ;;  %v1575_v47 = vadd.f32 %v1574_v7, %v1573_v52  ;;  %v1608_v27 = vsub.f32 %v3904_v56, %v3912_v13  ;;  %v1613_v19 = vsub.f32 %v3905_v11, %v3913_v34  ;;  %p2307_p8 = pnand %p2306_p2, %p3923_p5  ;;  %p2314_p13 = por %p2313_p6, %p2312_p11 }
 0x159   : > { %v1618_v12 = vsub.f32 %v3906_v25, %v3914_v48  ;;  %v1583_v31 = vadd.f32 %v1582_v18, %v1573_v52  ;;  %v1588_v33 = vmul.f32 %v1572_v3, %v3915_v40  ;;  %v1629_v10 = vsub.f32 %v3909_v22, %v3916_v32 }
 0x15a   : > { %v1634_v55 = vsub.f32 %v3910_v14, %v3917_v1  ;;  %v1577_v9 = vadd.f32 %v1576_v28, %v1575_v47  ;;  %v1609_v36 = vmul.f32 %v1608_v27, %v1608_v27  ;;  %v1614_v23 = vmul.f32 %v1613_v19, %v1613_v19  ;;  %p2308_p3 = pneg %p2307_p8 }
 0x15b   : > { %v1623_v26 = vsub.f32 %v3908_v6, %v1622_v15  ;;  %v1585_v29 = vadd.f32 %v1584_v2, %v1583_v31  ;;  %v1619_v20 = vmul.f32 %v1618_v12, %v1618_v12  ;;  %v1630_v35 = vmul.f32 %v1629_v10, %v1629_v10 }
 0x15c   : > { %v1635_v54 = vmul.f32 %v1634_v55, %v1634_v55  ;;  %v1579_v41 = vadd.f32 %v1578_v16, %v1577_v9  ;;  %v1615_v53 = vadd.f32 %v1614_v23, %v1609_v36  ;;  %v1637_v45 = vmul.f32 %v2106_v43, %v3918_v61  ;;  %p2315_p12 = pnand %p2314_p13, %p2308_p3 }
 0x15d   : > { %v1642_v59 = vmul.f32 %v2106_v43, %v3919_v51  ;;  %v1587_v50 = vadd.f32 %v1586_v30, %v1585_v29  ;;  %v1624_v62 = vmul.f32 %v1623_v26, %v1623_v26 }
 0x15e   : > { %v1581_v4 = vadd.f32 %v1580_v17, %v1579_v41  ;;  %v1638_v49 = vadd.f32 %v1637_v45, %v3920_v44  ;;  %v1620_v60 = vadd.f32 %v1619_v20, %v1615_v53  ;;  %v1636_v63 = vadd.f32 %v1635_v54, %v1630_v35 }
 0x15f   : > { %v1643_v0 = vadd.f32 %v1642_v59, %v1605_v5  ;;  %v1589_v46 = vadd.f32 %v1588_v33, %v1587_v50 }
 0x160   : > { %1590 = vst [vmem:[%s495_s29] sm:$0xff] %v1581_v4  ;;  %v1639_v8 = vsub.f32 %v3911_v24, %v1638_v49  ;;  %v1625_v39 = vadd.f32 %v1624_v62, %v1620_v60 }
 0x161   : > { %v1644_v58 = vsub.f32 %v3915_v40, %v1643_v0  ;;  %1591 = vst [vmem:[%s495_s29 + $0x8] sm:$0xff] %v1589_v46 }
 0x162   : > { %v1640_v42 = vmul.f32 %v1639_v8, %v1639_v8 }
 0x163   : > { %v1645_v3 = vmul.f32 %v1644_v58, %v1644_v58 }
 0x164   : > { %v1641_v57 = vadd.f32 %v1640_v42, %v1636_v63 }
 0x166   : > { %v1646_v5 = vadd.f32 %v1645_v3, %v1641_v57 }
 0x168   : > { %v1647_v37 = vadd.f32 %v1646_v5, %v1625_v39 }
 0x16a   : > { %1648 = vadd.xlane.f32.xlu0 %v1647_v37 }
 0x16b   : > { %2318 = shalt.err (!%p2315_p12)
}
 0x16c   : > { %s2319_s19 = scalar_lea.hbm %s3645_s28, 256  ;;  %s2323_s25 = scalar_lea.hbm %s3922_s1, 512 }
 0x16d   : > { %p2320_p4 = scmp.ne.s32.totalorder %s3645_s28, %s2319_s19  ;;  %p2324_p1 = scmp.lt.u32.totalorder %s3645_s28, %s3922_s1 }
 0x16e   : > { %p2325_p0 = scmp.lt.u32.totalorder %s2323_s25, %s2319_s19  ;;  %p2327_p2 = scmp.lt.u32.totalorder %s2319_s19, %s3645_s28 }
 0x16f   : > { %p2321_p9 = pnand %p2320_p4, %p3923_p5 }
 0x170   : > { %p2326_p7 = por %p2325_p0, %p2324_p1 }
 0x171   : > { %p2322_p10 = pneg %p2321_p9 }
 0x172   : > { %p2328_p8 = por %p2327_p2, %p2326_p7 }
 0x174   : > { %p2329_p3 = pnand %p2328_p8, %p2322_p10 }
 0x176   : > { %2332 = shalt.err (!%p2329_p3)
}
 0x177   : > { %1995 = dma.vmem_to_hbm [thread:$0]  (%p3923_p5), %s1704_s22, 256, %s3645_s28, %s3647_s20  }
 0x178   : > { %s1966_s2 = sshll.u32 %s3921_s27, 10  ;;  %s1684_s26 = sshll.u32 %s3602_s10, 4  ;;  %s3674_s26 = int_to_ptr.vmem [resolvable:$true] %s1684_s26 }
 0x179   : > { %s3924_s29 = sld [smem:[#allocation48_spill]]  ;;  %s1659_s19 = scalar_lea.sflag [#allocation4], %s2809_s23 }
 0x17a   : > { %s2333_s25 = scalar_lea.vmem %s3674_s26, 1024  ;;  %s2472_s24 = smov [#allocation14]  }
 0x17b   : > { %p2334_p11 = scmp.ne.s32.totalorder %s3674_s26, %s2333_s25  ;;  %s2337_s28 = sshll.u32 %s2472_s24, 4  ;;  %s2338_s28 = int_to_ptr.vmem [resolvable:$false] %s2337_s28 }
 0x17c   : > { %s2339_s10 = scalar_lea.vmem %s2338_s28, 2048  ;;  %p2340_p12 = scmp.lt.s32.totalorder %s3674_s26, %s2338_s28 }
 0x17d   : > { %p2335_p6 = pnand %p2334_p11, %p3923_p5  ;;  %p2341_p4 = scmp.lt.s32.totalorder %s2339_s10, %s2333_s25 }
 0x17f   : > { %s3672_s12 = scalar_lea.hbm %s3924_s29, %s1966_s2  ;;  %p2336_p13 = pneg %p2335_p6 }
 0x180   : > { %p2342_p9 = por %p2341_p4, %p2340_p12 }
 0x182   : > { %p2343_p10 = pnand %p2342_p9, %p2336_p13 }
 0x184   : > { %2346 = shalt.err (!%p2343_p10)
}
 0x185   : > { %s2347_s22 = scalar_lea.hbm %s3672_s12, 1024  ;;  %s2351_s30 = scalar_lea.hbm %s3924_s29, 2048 }
 0x186   : > { %p2348_p1 = scmp.ne.s32.totalorder %s3672_s12, %s2347_s22  ;;  %p2352_p2 = scmp.lt.u32.totalorder %s3672_s12, %s3924_s29 }
 0x187   : > { %p2353_p8 = scmp.lt.u32.totalorder %s2351_s30, %s2347_s22  ;;  %p2355_p11 = scmp.lt.u32.totalorder %s2347_s22, %s3672_s12 }
 0x188   : > { %p2349_p0 = pnand %p2348_p1, %p3923_p5 }
 0x189   : > { %p2354_p3 = por %p2353_p8, %p2352_p2 }
 0x18a   : > { %p2350_p7 = pneg %p2349_p0 }
 0x18b   : > { %p2356_p6 = por %p2355_p11, %p2354_p3 }
 0x18d   : > { %p2357_p13 = pnand %p2356_p6, %p2350_p7 }
 0x18f   : > { %2360 = shalt.err (!%p2357_p13)
}
 0x190   : > { %s2473_s25 = smov 256   ;;  %s2474_s28 = smov 16  }
 0x191   : > { %1994 = dma.vmem_to_hbm [thread:$0]  (%p3923_p5), %s3674_s26, 1024, %s3672_s12, %s1659_s19, %s2473_s25, %s2473_s25, %s2474_s28  }
 0x192   : > { %s1946_s10 = sshll.u32 %s2809_s23, 3  ;;  %s1962_s22 = sshll.u32 %s3921_s27, 7 }
 0x193   : > { %s502_s0 = scalar_lea.vmem [#allocation17], %s1946_s10  ;;  %s3925_s24 = sld [smem:[#allocation50_spill]] }
 0x194   : > { %s1717_s2 = sshll.u32 %s502_s0, 4  ;;  %s2475_s23 = smov [#allocation17]   ;;  %s1718_s2 = int_to_ptr.vmem [resolvable:$true] %s1717_s2 }
 0x195   : > { %s2361_s26 = scalar_lea.vmem %s1718_s2, 128  ;;  %s2365_s12 = sshll.u32 %s2475_s23, 4  ;;  %s2366_s12 = int_to_ptr.vmem [resolvable:$false] %s2365_s12 }
 0x196   : > { %p2362_p12 = scmp.ne.s32.totalorder %s1718_s2, %s2361_s26  ;;  %s2367_s27 = scalar_lea.vmem %s2366_s12, 256 }
 0x197   : > { %p2368_p10 = scmp.lt.s32.totalorder %s1718_s2, %s2366_s12  ;;  %p2369_p1 = scmp.lt.s32.totalorder %s2367_s27, %s2361_s26 }
 0x198   : > { %p2363_p4 = pnand %p2362_p12, %p3923_p5 }
 0x199   : > { %s3705_s1 = scalar_lea.hbm %s3925_s24, %s1962_s22  ;;  %p2370_p0 = por %p2369_p1, %p2368_p10 }
 0x19a   : > { %p2364_p9 = pneg %p2363_p4 }
 0x19c   : > { %p2371_p7 = pnand %p2370_p0, %p2364_p9 }
 0x1f7   : > { %v1649_v38 = vpop.xlane.xlu0 %1648 }
 0x1f8   : > { %v1650_v52 = vrot.slane %v1649_v38, 4 }
 0x1fa   : > { %v1651_v56 = vadd.f32 %v1650_v52, %v1649_v38 }
 0x1fc   : > { %v1652_v7 = vrot.slane %v1651_v56, 2 }
 0x1fe   : > { %v1653_v11 = vadd.f32 %v1652_v7, %v1651_v56 }
 0x200   : > { %v1654_v28 = vrot.slane %v1653_v11, 1 }
 0x202   : > { %v1655_v25 = vadd.f32 %v1654_v28, %v1653_v11 }
 0x204   : > { %1657 = vst [vmem:[%s502_s0] sm:$0xff] %v1655_v25 }
 0x205   : > { %2374 = shalt.err (!%p2371_p7)
}
 0x206   : > { %s2375_s19 = scalar_lea.hbm %s3705_s1, 128  ;;  %s2379_s10 = scalar_lea.hbm %s3925_s24, 256 }
 0x207   : > { %p2376_p2 = scmp.ne.s32.totalorder %s3705_s1, %s2375_s19  ;;  %p2380_p11 = scmp.lt.u32.totalorder %s3705_s1, %s3925_s24 }
 0x208   : > { %p2381_p6 = scmp.lt.u32.totalorder %s2379_s10, %s2375_s19  ;;  %p2383_p12 = scmp.lt.u32.totalorder %s2375_s19, %s3705_s1 }
 0x209   : > { %p2377_p8 = pnand %p2376_p2, %p3923_p5 }
 0x20a   : > { %p2382_p13 = por %p2381_p6, %p2380_p11 }
 0x20b   : > { %p2378_p3 = pneg %p2377_p8 }
 0x20c   : > { %p2384_p4 = por %p2383_p12, %p2382_p13 }
 0x20e   : > { %p2385_p9 = pnand %p2384_p4, %p2378_p3 }
 0x210   : > { %2388 = shalt.err (!%p2385_p9)
}
 0x211   : > { %1996 = dma.vmem_to_hbm [thread:$0]  (%p3923_p5), %s1718_s2, 128, %s3705_s1, %s3647_s20  }
 0x212 PF: > { %s1729_s30 = sand.u32 1, %s2439_s13   ;;  %p3926_p10 = scmp.ne.s32.totalorder %s3811_s16, 0 }
 0x213   : > { %p3927_p1 = scmp.ge.s32.totalorder %s2459_s18, 2  ;;  %s1730_s11 = scalar_lea.sflag [#allocation4], %s1729_s30 }
 0x215   : > { %p2024_p0 = pnand %p3927_p1, %p3926_p10 }
 0x217   : > { %2430 = dma.done.wait (!%p2024_p0), %s1730_s11, 1024  }
 0x218   : > { %2432 = vsyncadd (!%p2024_p0), %s1730_s11, 4294966272  ;;  %s3928_s26 = sadd.s32 4294967294, %s2459_s18  }
 0x219   : > { %s1738_s23 = sand.u32 1, %s3928_s26  }
 0x21a   : > { %s1739_s12 = scalar_lea.sflag [#allocation16], %s1738_s23 }
 0x21b   : > { %2434 = dma.done.wait (!%p2024_p0), %s1739_s12, 384  }
 0x21c   : > { %2436 = vsyncadd (!%p2024_p0), %s1739_s12, 4294966912  ;;  %s33_s18 = sadd.s32 1, %s2459_s18   ;;  %s3929_s13 = smov %s2443_s14 }
 0x21d   : > { %p30_p5 = scmp.ge.s32.totalorder %s33_s18, 4   ;;  %s3930_s14 = smov %s2447_s15 }
 0x21e   : > { %s3931_s15 = smov %s2759_s9  ;;  %s3932_s16 = smov %s2455_s17 }
 0x21f   : > { %s3933_s17 = smov %s3935_s21  ;;  %32 = sbr.rel (!%p30_p5) target bundleno = 18 (0x12), region = 255 }
 0x226   :  { %1753 = vsyncpa [#allocation3], 1 }
 0x227   :  { %1755 = vsyncpa [#allocation3 + $0x1], 1 }
 0x228   :  { %1756 = vsyncpa [#allocation6], 1 }
 0x229   :  { %1757 = vsyncpa [#allocation9], 1 }
 0x22a   :  { %1758 = vsyncpa [#allocation12], 1 }
 0x22b   :  { %1759 = vsyncpa [#allocation4], 1 }
 0x22c   :  { %1761 = vsyncpa [#allocation4 + $0x1], 1 }
 0x22d   :  { %1762 = vsyncpa [#allocation16], 1 }
 0x22e   :  { %1764 = vsyncpa [#allocation16 + $0x1], 1 }

</bundles_post_ra>
